<compile_context>
chip_gen: v5e
topology: v5e:2x2
jax: 0.10.0
libtpu: 0.0.40
codegen_flags: <defaults>
</compile_context>

<pallas_src>
import functools

import jax
import jax.numpy as jnp
from jax.experimental import pallas as pl
from jax.experimental.pallas import tpu as pltpu

NEG_SLOPE = 0.01  # PyTorch nn.LeakyReLU default


def _round_up(x, m):
    return (x + m - 1) // m * m


def _cdiv(a, b):
    return -(-a // b)


def _pad2d(a, rows, cols):
    r, c = a.shape
    return jnp.pad(a, ((0, rows - r), (0, cols - c)))


def _vmem_capacity_bytes():
    """Per-TensorCore physical VMEM; conservative 64 MiB (v7x) if unknown."""
    try:
        cap = getattr(pltpu.get_tpu_info(), "vmem_capacity_bytes", None)
        if cap:
            return int(cap)
    except Exception:
        pass
    return 64 * 1024 * 1024


def _mapper_lora_kernel(x_ref, w1c_ref, b1s_ref, bias1_ref, a2_ref,
                        w2c_ref, bias2_ref, o_ref, hha_ref, *, h1p, neg_slope):
    """Fused (LoRALinear + LeakyReLU) x 2.

    grid = (m_tiles, n2_tiles), j (layer-2 output columns) innermost and
    'arbitrary'.  At j == 0 the layer-1 hidden activation h and its low-rank
    projection h @ A2 are computed once for the current M tile and stored
    (already in bf16) into the [h | h@A2] VMEM scratch; every layer-2 column
    tile is then a single matmul against [W2 ; scale*B2].
    """
    j = pl.program_id(1)

    @pl.when(j == 0)
    def _():
        x = x_ref[...].astype(jnp.bfloat16)
        # One MXU pass gives both the main term and x @ A1.
        hxa = jnp.dot(x, w1c_ref[...], preferred_element_type=jnp.float32)
        h = hxa[:, :h1p]
        xa = hxa[:, h1p:].astype(jnp.bfloat16)
        h = h + jnp.dot(xa, b1s_ref[...], preferred_element_type=jnp.float32)
        h = h + bias1_ref[...].astype(jnp.float32)
        h = jnp.where(h >= 0, h, neg_slope * h).astype(jnp.bfloat16)
        # Scratch holds [h | h @ A2] in bf16, shared by every layer-2 tile.
        hha_ref[:, :h1p] = h
        hha_ref[:, h1p:] = jnp.dot(
            h, a2_ref[...], preferred_element_type=jnp.float32
        ).astype(jnp.bfloat16)

    # Layer 2: one (tile_m, tile_n) output block per grid step, single matmul.
    y = jnp.dot(hha_ref[...], w2c_ref[...], preferred_element_type=jnp.float32)
    y = y + bias2_ref[...].astype(jnp.float32)
    y = jnp.where(y >= 0, y, neg_slope * y)
    o_ref[...] = y.astype(o_ref.dtype)


def mapper_lora_forward(x, p):
    """x: (M, K). p: padded / pre-scaled / bf16 params dict (MapperLoRAPallas)."""
    M, K = x.shape
    r = p["r"]
    h1p = p["w1c"].shape[1] - r
    h2p = p["w2c"].shape[1]
    h2 = p["h2"]

    x_bytes = x.dtype.itemsize
    out_bytes = x.dtype.itemsize
    wb = p["w1c"].dtype.itemsize  # 2 (bf16)

    vmem_cap = _vmem_capacity_bytes()
    budget = int(vmem_cap * 0.55)

    def footprint(tm, tn, w2_bufs=2):
        f = 0
        f += 2 * tm * K * x_bytes                  # x tile (double buffered)
        f += 2 * K * (h1p + r) * wb                # [W1 | A1] resident
        f += 2 * r * h1p * wb                      # scale*B1
        f += 2 * 8 * h1p * wb                      # bias1 (sublane padded)
        f += 2 * h1p * r * wb                      # A2
        f += w2_bufs * (h1p + r) * tn * wb         # [W2 ; scale*B2] blocks
        f += 2 * 8 * tn * wb                       # bias2 block
        f += 2 * tm * tn * out_bytes               # output tile
        f += tm * (h1p + r) * wb                   # [h | h@A2] scratch
        return f

    def pick_tiles():
        cands_n = [c for c in (h2p, 1024, 512, 256, 128)
                   if c <= h2p and h2p % c == 0]
        cap = 512                                  # review: raise tile_m cap
        while cap >= 8:
            m_tiles = _cdiv(M, cap)
            if m_tiles == 1 and M >= 256:
                m_tiles = 2                        # v7x: feed both TensorCores
            tm = _round_up(_cdiv(M, m_tiles), 8)
            for tn in cands_n:
                if footprint(tm, tn) <= budget:
                    return tm, tn
            cap //= 2
        # TODO(synk): very large input_size / h1 need a K-reduction grid axis
        # with an f32 accumulator; fall back to the smallest tiling here.
        return 8, cands_n[-1]

    tile_m, tile_n = pick_tiles()
    m_tiles = _cdiv(M, tile_m)
    Mp = m_tiles * tile_m
    n_tiles = h2p // tile_n

    # Deeper W2 buffering only helps when the column grid is deep (v5e DMA).
    w2_bufs = 2
    if n_tiles > 2 and footprint(tile_m, tile_n, w2_bufs=3) <= budget:
        w2_bufs = 3
    if w2_bufs == 3:
        w2_spec = pl.BlockSpec((h1p + r, tile_n), lambda i, j: (0, j),
                               pipeline_mode=pl.Buffered(3))
    else:
        w2_spec = pl.BlockSpec((h1p + r, tile_n), lambda i, j: (0, j))

    fp = footprint(tile_m, tile_n, w2_bufs)
    vmem_limit = max(fp + (16 << 20), 32 << 20)
    vmem_limit = min(vmem_limit, int(vmem_cap * 0.8))
    vmem_limit = max(vmem_limit, fp)

    xp = jnp.pad(x, ((0, Mp - M), (0, 0))) if Mp > M else x

    flops = 2 * Mp * (K * (h1p + r) + r * h1p + h1p * r + (h1p + r) * h2p)
    param_bytes = sum(int(p[k].size) * p[k].dtype.itemsize
                      for k in ("w1c", "b1s", "bias1", "a2", "bias2"))
    param_bytes += m_tiles * int(p["w2c"].size) * p["w2c"].dtype.itemsize
    bytes_accessed = Mp * K * x_bytes + Mp * h2p * out_bytes + param_bytes
    cost = pl.CostEstimate(flops=flops, transcendentals=0,
                           bytes_accessed=bytes_accessed)

    out = pl.pallas_call(
        functools.partial(_mapper_lora_kernel, h1p=h1p, neg_slope=NEG_SLOPE),
        out_shape=jax.ShapeDtypeStruct((Mp, h2p), x.dtype),
        grid=(m_tiles, n_tiles),
        in_specs=[
            pl.BlockSpec((tile_m, K),    lambda i, j: (i, 0)),   # x tile
            pl.BlockSpec((K, h1p + r),   lambda i, j: (0, 0)),   # [W1 | A1]
            pl.BlockSpec((r, h1p),       lambda i, j: (0, 0)),   # scale*B1
            pl.BlockSpec((1, h1p),       lambda i, j: (0, 0)),   # bias1
            pl.BlockSpec((h1p, r),       lambda i, j: (0, 0)),   # A2
            w2_spec,                                             # [W2 ; s*B2]
            pl.BlockSpec((1, tile_n),    lambda i, j: (0, j)),   # bias2 block
        ],
        out_specs=pl.BlockSpec((tile_m, tile_n), lambda i, j: (i, j)),
        scratch_shapes=[pltpu.VMEM((tile_m, h1p + r), jnp.bfloat16)],
        compiler_params=pltpu.CompilerParams(
            dimension_semantics=("parallel", "arbitrary"),
            vmem_limit_bytes=int(vmem_limit)),
        cost_estimate=cost,
    )(xp, p["w1c"], p["b1s"], p["bias1"], p["a2"], p["w2c"], p["bias2"])

    if Mp != M or h2p != h2:
        out = out[:M, :h2]
    return out


class MapperLoRAPallas:
    """Mirror of the PyTorch MapperLoRA module (forward only)."""

    def __init__(self, input_size, token_length, output_n, r=16, alpha=32,
                 key=None, dtype=jnp.float32):
        self.r = r
        self.alpha = alpha
        self.scale = float(alpha) / float(r)
        h1 = token_length * output_n // 2
        h2 = token_length * output_n

        if key is None:
            key = jax.random.PRNGKey(0)
        ks = jax.random.split(key, 8)

        def init_linear(k_w, k_b, fan_in, fan_out):
            bound = 1.0 / (fan_in ** 0.5)
            w = jax.random.uniform(k_w, (fan_in, fan_out), dtype,
                                   minval=-bound, maxval=bound)
            b = jax.random.uniform(k_b, (1, fan_out), dtype,
                                   minval=-bound, maxval=bound)
            return w, b

        # Raw parameters, stored pre-transposed as (in, out) / (in, r) / (r, out).
        w1, b1 = init_linear(ks[0], ks[1], input_size, h1)
        a1 = jax.random.normal(ks[2], (input_size, r), dtype) * 0.02
        bb1 = jax.random.normal(ks[3], (r, h1), dtype) * 0.02
        w2, b2 = init_linear(ks[4], ks[5], h1, h2)
        a2 = jax.random.normal(ks[6], (h1, r), dtype) * 0.02
        bb2 = jax.random.normal(ks[7], (r, h2), dtype) * 0.02
        self.raw = dict(w1=w1, b1=b1, a1=a1, bb1=bb1,
                        w2=w2, b2=b2, a2=a2, bb2=bb2)

        # One-time kernel-facing prep:
        #  - lane-pad h1/h2 to multiples of 128 (zeros are semantically inert),
        #  - fold alpha/r into the LoRA B matrices,
        #  - fold A1 into W1's columns and scale*B2 under W2's rows,
        #  - cast everything to bf16 (f32 accumulation happens in-kernel).
        bf = jnp.bfloat16
        h1p = _round_up(h1, 128)
        h2p = _round_up(h2, 128)
        w1c = jnp.concatenate([_pad2d(w1, input_size, h1p), a1], axis=1)
        w2c = jnp.concatenate([_pad2d(w2, h1p, h2p),
                               _pad2d(bb2 * self.scale, r, h2p)], axis=0)
        self.params = dict(
            w1c=w1c.astype(bf),                                # (K, h1p + r)
            b1s=_pad2d(bb1 * self.scale, r, h1p).astype(bf),   # (r, h1p)
            bias1=_pad2d(b1, 1, h1p).astype(bf),               # (1, h1p)
            a2=_pad2d(a2, h1p, r).astype(bf),                  # (h1p, r)
            w2c=w2c.astype(bf),                                # (h1p + r, h2p)
            bias2=_pad2d(b2, 1, h2p).astype(bf),               # (1, h2p)
            h2=h2, r=r,
        )

    def __call__(self, x):
        return mapper_lora_forward(x, self.params)


def _reference_forward(m: MapperLoRAPallas, x):
    """Pure-JAX f32 reference (unpadded raw weights)."""
    p, s = m.raw, m.scale

    def layer(x, w, a, b, bias):
        y = x @ w + bias + s * ((x @ a) @ b)
        return jnp.where(y >= 0, y, NEG_SLOPE * y)

    h = layer(x, p["w1"], p["a1"], p["bb1"], p["b1"])
    return layer(h, p["w2"], p["a2"], p["bb2"], p["b2"])


def _emulated_reference(m: MapperLoRAPallas, x):
    """Pure-JAX reference that matches the kernel's bf16-weight numerics."""
    p, s = m.raw, m.scale
    bf = jnp.bfloat16

    def layer(x, w, a, b, bias):
        xb = x.astype(bf)
        y = jnp.dot(xb, w.astype(bf), preferred_element_type=jnp.float32)
        xa = jnp.dot(xb, a.astype(bf),
                     preferred_element_type=jnp.float32).astype(bf)
        y = y + jnp.dot(xa, (b * s).astype(bf),
                        preferred_element_type=jnp.float32)
        y = y + bias.astype(bf).astype(jnp.float32)
        return jnp.where(y >= 0, y, NEG_SLOPE * y)

    h = layer(x, p["w1"], p["a1"], p["bb1"], p["b1"])
    return layer(h, p["w2"], p["a2"], p["bb2"], p["b2"])


if __name__ == "__main__":
    key = jax.random.PRNGKey(0)
    k_param, k_x = jax.random.split(key)

    # Small demo shapes: M padding (12 -> 16), K = 64 (< 128, unpadded),
    # hidden = 384, output = 768 (grid collapses to (1, 1) on all generations).
    batch = 12
    input_size = 64
    token_length = 8
    output_n = 96

    model = MapperLoRAPallas(input_size, token_length, output_n,
                             r=16, alpha=32, key=k_param)
    x = jax.random.normal(k_x, (batch, input_size), jnp.float32)

    out = jax.block_until_ready(model(x))
    assert out.shape == (batch, token_length * output_n), out.shape

    # Tight check against a reference emulating the kernel's bf16 rounding.
    ref_bf = _emulated_reference(model, x)
    err_bf = float(jnp.max(jnp.abs(out - ref_bf)))
    assert jnp.allclose(out, ref_bf, atol=2e-3, rtol=2e-3), (
        f"mismatch vs bf16-emulated reference; max abs diff = {err_bf}")

    # Loose sanity check against the pure f32 reference (bf16 weights cause a
    # small, expected deviation).
    ref32 = _reference_forward(model, x)
    err32 = float(jnp.max(jnp.abs(out - ref32)))
    assert jnp.allclose(out, ref32, atol=5e-2, rtol=5e-2), (
        f"mismatch vs f32 reference; max abs diff = {err32}")

    print("KERNEL_OK")
</pallas_src>

<mosaic_0001>
module attributes {stable_mosaic.version = 11 : i64} {
  func.func @_mapper_lora_kernel(%arg0: i32, %arg1: i32, %arg2: memref<16x64xf32, #tpu.memory_space<vmem>>, %arg3: memref<64x400xbf16, #tpu.memory_space<vmem>>, %arg4: memref<16x384xbf16, #tpu.memory_space<vmem>>, %arg5: memref<1x384xbf16, #tpu.memory_space<vmem>>, %arg6: memref<384x16xbf16, #tpu.memory_space<vmem>>, %arg7: memref<400x768xbf16, #tpu.memory_space<vmem>>, %arg8: memref<1x768xbf16, #tpu.memory_space<vmem>>, %arg9: memref<16x768xf32, #tpu.memory_space<vmem>>, %arg10: memref<16x400xbf16, #tpu.memory_space<vmem>>) attributes {dimension_semantics = [#tpu.dimension_semantics<parallel>, #tpu.dimension_semantics<arbitrary>], iteration_bounds = array<i64: 1, 1>, scalar_prefetch = 0 : i64, scratch_operands = 1 : i64, tpu.core_type = #tpu.core_type<tc>, window_params = [{transform_indices = @transform_0, window_bounds = array<i64: 16, 64>}, {pipeline_mode = #tpu.pipeline_mode<synchronous>, transform_indices = @transform_1, window_bounds = array<i64: 64, 400>}, {pipeline_mode = #tpu.pipeline_mode<synchronous>, transform_indices = @transform_2, window_bounds = array<i64: 16, 384>}, {pipeline_mode = #tpu.pipeline_mode<synchronous>, transform_indices = @transform_3, window_bounds = array<i64: 1, 384>}, {pipeline_mode = #tpu.pipeline_mode<synchronous>, transform_indices = @transform_4, window_bounds = array<i64: 384, 16>}, {transform_indices = @transform_5, window_bounds = array<i64: 400, 768>}, {transform_indices = @transform_6, window_bounds = array<i64: 1, 768>}, {transform_indices = @transform_7, window_bounds = array<i64: 16, 768>}]} {
    %c0_i32 = arith.constant 0 : i32
    %0 = arith.cmpi eq, %arg1, %c0_i32 : i32
    %1 = arith.extui %0 : i1 to i32
    %c0_i32_0 = arith.constant 0 : i32
    %2 = arith.cmpi ne, %1, %c0_i32_0 : i32
    scf.if %2 {
      %c0_10 = arith.constant 0 : index
      %c0_11 = arith.constant 0 : index
      %16 = vector.load %arg2[%c0_10, %c0_11] : memref<16x64xf32, #tpu.memory_space<vmem>>, vector<16x64xf32>
      %17 = arith.truncf %16 : vector<16x64xf32> to vector<16x64xbf16>
      %c0_12 = arith.constant 0 : index
      %c0_13 = arith.constant 0 : index
      %18 = vector.load %arg3[%c0_12, %c0_13] : memref<64x400xbf16, #tpu.memory_space<vmem>>, vector<64x400xbf16>
      %cst_14 = arith.constant dense<0.000000e+00> : vector<16x400xf32>
      %19 = tpu.matmul %17, %18, %cst_14 {dimension_numbers = #tpu.dot_dimension_numbers<[1], [0], [0], [1], [0, 0, 1, 1], [], []>} : vector<16x64xbf16>, vector<64x400xbf16>, vector<16x400xf32> -> vector<16x400xf32>
      %20 = vector.extract_strided_slice %19 {offsets = [0, 0], sizes = [16, 384], strides = [1, 1]} : vector<16x400xf32> to vector<16x384xf32>
      %21 = vector.extract_strided_slice %19 {offsets = [0, 384], sizes = [16, 16], strides = [1, 1]} : vector<16x400xf32> to vector<16x16xf32>
      %22 = arith.truncf %21 : vector<16x16xf32> to vector<16x16xbf16>
      %c0_15 = arith.constant 0 : index
      %c0_16 = arith.constant 0 : index
      %23 = vector.load %arg4[%c0_15, %c0_16] : memref<16x384xbf16, #tpu.memory_space<vmem>>, vector<16x384xbf16>
      %cst_17 = arith.constant dense<0.000000e+00> : vector<16x384xf32>
      %24 = tpu.matmul %22, %23, %cst_17 {dimension_numbers = #tpu.dot_dimension_numbers<[1], [0], [0], [1], [0, 0, 1, 1], [], []>} : vector<16x16xbf16>, vector<16x384xbf16>, vector<16x384xf32> -> vector<16x384xf32>
      %25 = arith.addf %20, %24 : vector<16x384xf32>
      %c0_18 = arith.constant 0 : index
      %c0_19 = arith.constant 0 : index
      %26 = vector.load %arg5[%c0_18, %c0_19] : memref<1x384xbf16, #tpu.memory_space<vmem>>, vector<1x384xbf16>
      %27 = arith.extf %26 : vector<1x384xbf16> to vector<1x384xf32>
      %28 = vector.broadcast %27 : vector<1x384xf32> to vector<16x384xf32>
      %29 = arith.addf %25, %28 : vector<16x384xf32>
      %cst_20 = arith.constant 0.000000e+00 : f32
      %30 = vector.broadcast %cst_20 : f32 to vector<16x384xf32>
      %31 = arith.cmpf oge, %29, %30 : vector<16x384xf32>
      %cst_21 = arith.constant 0.00999999977 : f32
      %32 = vector.broadcast %cst_21 : f32 to vector<16x384xf32>
      %33 = arith.mulf %32, %29 : vector<16x384xf32>
      %34 = arith.select %31, %29, %33 : vector<16x384xi1>, vector<16x384xf32>
      %35 = arith.truncf %34 : vector<16x384xf32> to vector<16x384xbf16>
      %c0_22 = arith.constant 0 : index
      %c0_23 = arith.constant 0 : index
      %36 = vector.load %arg10[%c0_22, %c0_23] : memref<16x400xbf16, #tpu.memory_space<vmem>>, vector<16x384xbf16>
      tpu.vector_store %arg10[%c0_22, %c0_23], %35 {strides = array<i32>} : memref<16x400xbf16, #tpu.memory_space<vmem>>, vector<16x384xbf16>,
      %c0_24 = arith.constant 0 : index
      %c0_25 = arith.constant 0 : index
      %37 = vector.load %arg6[%c0_24, %c0_25] : memref<384x16xbf16, #tpu.memory_space<vmem>>, vector<384x16xbf16>
      %cst_26 = arith.constant dense<0.000000e+00> : vector<16x16xf32>
      %38 = tpu.matmul %35, %37, %cst_26 {dimension_numbers = #tpu.dot_dimension_numbers<[1], [0], [0], [1], [0, 0, 1, 1], [], []>} : vector<16x384xbf16>, vector<384x16xbf16>, vector<16x16xf32> -> vector<16x16xf32>
      %39 = arith.truncf %38 : vector<16x16xf32> to vector<16x16xbf16>
      %c0_27 = arith.constant 0 : index
      %c384 = arith.constant 384 : index
      %40 = vector.load %arg10[%c0_27, %c384] : memref<16x400xbf16, #tpu.memory_space<vmem>>, vector<16x16xbf16>
      tpu.vector_store %arg10[%c0_27, %c384], %39 {strides = array<i32>} : memref<16x400xbf16, #tpu.memory_space<vmem>>, vector<16x16xbf16>,
    } else {
    }
    %c0 = arith.constant 0 : index
    %c0_1 = arith.constant 0 : index
    %3 = vector.load %arg10[%c0, %c0_1] : memref<16x400xbf16, #tpu.memory_space<vmem>>, vector<16x400xbf16>
    %c0_2 = arith.constant 0 : index
    %c0_3 = arith.constant 0 : index
    %4 = vector.load %arg7[%c0_2, %c0_3] : memref<400x768xbf16, #tpu.memory_space<vmem>>, vector<400x768xbf16>
    %cst = arith.constant dense<0.000000e+00> : vector<16x768xf32>
    %5 = tpu.matmul %3, %4, %cst {dimension_numbers = #tpu.dot_dimension_numbers<[1], [0], [0], [1], [0, 0, 1, 1], [], []>} : vector<16x400xbf16>, vector<400x768xbf16>, vector<16x768xf32> -> vector<16x768xf32>
    %c0_4 = arith.constant 0 : index
    %c0_5 = arith.constant 0 : index
    %6 = vector.load %arg8[%c0_4, %c0_5] : memref<1x768xbf16, #tpu.memory_space<vmem>>, vector<1x768xbf16>
    %7 = arith.extf %6 : vector<1x768xbf16> to vector<1x768xf32>
    %8 = vector.broadcast %7 : vector<1x768xf32> to vector<16x768xf32>
    %9 = arith.addf %5, %8 : vector<16x768xf32>
    %cst_6 = arith.constant 0.000000e+00 : f32
    %10 = vector.broadcast %cst_6 : f32 to vector<16x768xf32>
    %11 = arith.cmpf oge, %9, %10 : vector<16x768xf32>
    %cst_7 = arith.constant 0.00999999977 : f32
    %12 = vector.broadcast %cst_7 : f32 to vector<16x768xf32>
    %13 = arith.mulf %12, %9 : vector<16x768xf32>
    %14 = arith.select %11, %9, %13 : vector<16x768xi1>, vector<16x768xf32>
    %c0_8 = arith.constant 0 : index
    %c0_9 = arith.constant 0 : index
    %15 = vector.load %arg9[%c0_8, %c0_9] : memref<16x768xf32, #tpu.memory_space<vmem>>, vector<16x768xf32>
    tpu.vector_store %arg9[%c0_8, %c0_9], %14 {strides = array<i32>} : memref<16x768xf32, #tpu.memory_space<vmem>>, vector<16x768xf32>,
    return
  }
  func.func @transform_0(%arg0: i32, %arg1: i32) -> (i32, i32) {
    %c0_i32 = arith.constant 0 : i32
    %c0_i32_0 = arith.constant 0 : i32
    return %arg0, %c0_i32 : i32, i32
  }
  func.func @transform_1(%arg0: i32, %arg1: i32) -> (i32, i32) {
    %c0_i32 = arith.constant 0 : i32
    %c0_i32_0 = arith.constant 0 : i32
    %c0_i32_1 = arith.constant 0 : i32
    return %c0_i32, %c0_i32_0 : i32, i32
  }
  func.func @transform_2(%arg0: i32, %arg1: i32) -> (i32, i32) {
    %c0_i32 = arith.constant 0 : i32
    %c0_i32_0 = arith.constant 0 : i32
    %c0_i32_1 = arith.constant 0 : i32
    return %c0_i32, %c0_i32_0 : i32, i32
  }
  func.func @transform_3(%arg0: i32, %arg1: i32) -> (i32, i32) {
    %c0_i32 = arith.constant 0 : i32
    %c0_i32_0 = arith.constant 0 : i32
    %c0_i32_1 = arith.constant 0 : i32
    return %c0_i32, %c0_i32_0 : i32, i32
  }
  func.func @transform_4(%arg0: i32, %arg1: i32) -> (i32, i32) {
    %c0_i32 = arith.constant 0 : i32
    %c0_i32_0 = arith.constant 0 : i32
    %c0_i32_1 = arith.constant 0 : i32
    return %c0_i32, %c0_i32_0 : i32, i32
  }
  func.func @transform_5(%arg0: i32, %arg1: i32) -> (i32, i32) {
    %c0_i32 = arith.constant 0 : i32
    %c0_i32_0 = arith.constant 0 : i32
    return %c0_i32, %arg1 : i32, i32
  }
  func.func @transform_6(%arg0: i32, %arg1: i32) -> (i32, i32) {
    %c0_i32 = arith.constant 0 : i32
    %c0_i32_0 = arith.constant 0 : i32
    return %c0_i32, %arg1 : i32, i32
  }
  func.func @transform_7(%arg0: i32, %arg1: i32) -> (i32, i32) {
    %c0_i32 = arith.constant 0 : i32
    return %arg0, %arg1 : i32, i32
  }
}

</mosaic_0001>

<bundles_post_ra>
// kernel: tpu_custom_call.1
= control target key start
LH: loop header
LB: loop body
LE: loop exit
PB: predicated region body
PF: predicated region fallthrough
CT: control target
= control target key end

     0   :  { %12 = vsyncpa [#allocation4], 0  ;;  %s3295_s0 = inlined_call_operand.vmem [shape: f32[16,64], index: 0, kind: input, shape index: {}]   ;;  %s3296_s1 = inlined_call_operand.vmem [shape: bf16[64,400], index: 1, kind: input, shape index: {}]   ;;  %s3297_s2 = inlined_call_operand.vmem [shape: bf16[16,384], index: 2, kind: input, shape index: {}]   ;;  %s3298_s3 = inlined_call_operand.vmem [shape: bf16[1,384], index: 3, kind: input, shape index: {}]   ;;  %s3299_s4 = inlined_call_operand.vmem [shape: bf16[384,16], index: 4, kind: input, shape index: {}]   ;;  %s3300_s5 = inlined_call_operand.hbm [shape: bf16[400,768], index: 5, kind: input, shape index: {}]   ;;  %s3301_s6 = inlined_call_operand.vmem [shape: bf16[1,768], index: 6, kind: input, shape index: {}]   ;;  %s3302_s7 = inlined_call_operand.hbm [shape: f32[16,768], index: 7, kind: output, shape index: {}]  }
   0x1   :  { %13 = vsyncpa [#allocation5], 0  ;;  %s28_s26 = sshll.u32 %s3300_s5, 4  ;;  %s2988_s27 = smov [#allocation3]   ;;  %s29_s26 = int_to_ptr.hbm [resolvable:$true] %s28_s26 }
   0x2   :  { %s30_s28 = sshll.u32 %s2988_s27, 4  ;;  %s2989_s29 = smov 384   ;;  %s31_s28 = int_to_ptr.vmem [resolvable:$true] %s30_s28 }
   0x3   :  { %s2990_s30 = smov 24  }
   0x4   :  { %36 = dma.hbm_to_vmem [thread:$0]  %s29_s26, 19200, %s31_s28, [#allocation4], %s2989_s29, %s2989_s29, %s2990_s30  }
   0x5   :  { %2984 = dma.done.wait [#allocation4], 19200  }
   0x6   :  { %2985 = vsyncadd [#allocation4], 4294948096  ;;  %v2746_v0 = vld [vmem:[%s3296_s1 + $0x6c] sm:$0xf]  ;;  %v1992_v1 = vld [vmem:[%s3296_s1 + $0x78] sm:$0xf0] }
   0x7   :  { %v2742_v2 = vld [vmem:[%s3296_s1 + $0x4c] sm:$0xf]  ;;  %v1995_v3 = vor.u32 %v2746_v0, %v1992_v1  ;;  %v1976_v4 = vld [vmem:[%s3296_s1 + $0x58] sm:$0xf0]  ;;  %v1982_v8 = vld [vmem:[%s3296_s1 + $0x60] sm:$0xf] }
   0x8   :  { %v2738_v5 = vld [vmem:[%s3296_s1 + $0x2c] sm:$0xf]  ;;  %v1979_v6 = vor.u32 %v2742_v2, %v1976_v4  ;;  %v1960_v7 = vld [vmem:[%s3296_s1 + $0x38] sm:$0xf0]  ;;  %v2747_v9 = vld [vmem:[%s3296_s1 + $0x6c] sm:$0xf0] }
   0x9   :  { %197 = vmatpush.bf16.msra.mxu3 %v1995_v3  ;;  %v1983_v10 = vor.u32 %v2747_v9, %v1982_v8  ;;  %v2745_v11 = vld [vmem:[%s3296_s1 + $0x64] sm:$0xf]  ;;  %v1984_v12 = vld [vmem:[%s3296_s1 + $0x70] sm:$0xf0]  ;;  %v1990_v13 = vld [vmem:[%s3296_s1 + $0x68] sm:$0xf]  ;;  %v1963_v24 = vor.u32 %v2738_v5, %v1960_v7 }
   0xa   :  { %v1987_v14 = vor.u32 %v2745_v11, %v1984_v12  ;;  %v2748_v15 = vld [vmem:[%s3296_s1 + $0x74] sm:$0xf0]  ;;  %v1966_v16 = vld [vmem:[%s3296_s1 + $0x40] sm:$0xf]  ;;  %v2743_v17 = vld [vmem:[%s3296_s1 + $0x4c] sm:$0xf0] }
   0xb   :  { %v2734_v18 = vld [vmem:[%s3296_s1 + $0xc] sm:$0xf]  ;;  %155 = vmatpush.bf16.msra.mxu0 %v1983_v10  ;;  %v1991_v19 = vor.u32 %v2748_v15, %v1990_v13  ;;  %v1967_v20 = vor.u32 %v2743_v17, %v1966_v16  ;;  %v2741_v21 = vld [vmem:[%s3296_s1 + $0x44] sm:$0xf]  ;;  %v1968_v22 = vld [vmem:[%s3296_s1 + $0x50] sm:$0xf0] }
   0xc   :  { %v1974_v23 = vld [vmem:[%s3296_s1 + $0x48] sm:$0xf]  ;;  %169 = vmatpush.bf16.msra.mxu1 %v1987_v14  ;;  %v1971_v25 = vor.u32 %v2741_v21, %v1968_v22  ;;  %v2744_v26 = vld [vmem:[%s3296_s1 + $0x54] sm:$0xf0]  ;;  %v1950_v27 = vld [vmem:[%s3296_s1 + $0x20] sm:$0xf] }
   0xd   :  { %198 = vmatpush.bf16.msra.mxu3 %v1979_v6  ;;  %v2739_v28 = vld [vmem:[%s3296_s1 + $0x2c] sm:$0xf0]  ;;  %v1944_v29 = vld [vmem:[%s3296_s1 + $0x18] sm:$0xf0]  ;;  %183 = vmatpush.bf16.msra.mxu2 %v1991_v19  ;;  %v1975_v30 = vor.u32 %v2744_v26, %v1974_v23  ;;  %v2737_v31 = vld [vmem:[%s3296_s1 + $0x24] sm:$0xf] }
   0xe   :  { %v1952_v32 = vld [vmem:[%s3296_s1 + $0x30] sm:$0xf0]  ;;  %v1958_v33 = vld [vmem:[%s3296_s1 + $0x28] sm:$0xf]  ;;  %v2740_v34 = vld [vmem:[%s3296_s1 + $0x34] sm:$0xf0]  ;;  %v1951_v36 = vor.u32 %v2739_v28, %v1950_v27  ;;  %v1947_v37 = vor.u32 %v2734_v18, %v1944_v29 }
   0xf   :  { %v48_v35 = vld [vmem:[%s3295_s0] sm:$0xff]  ;;  %156 = vmatpush.bf16.msra.mxu0 %v1967_v20  ;;  %v49_v38 = vld [vmem:[%s3295_s0 + $0x8] sm:$0xff]  ;;  %v1955_v39 = vor.u32 %v2737_v31, %v1952_v32  ;;  %v2735_v41 = vld [vmem:[%s3296_s1 + $0xc] sm:$0xf0]  ;;  %v1959_v42 = vor.u32 %v2740_v34, %v1958_v33  ;;  %vm147_vm0 = vcmask 523264   ;;  %vm228_vm1 = vcmask 130048  }
  0x10   :  { %170 = vmatpush.bf16.msra.mxu1 %v1971_v25  ;;  %v1934_v40 = vld [vmem:[%s3296_s1] sm:$0xf]  ;;  %v2733_v43 = vld [vmem:[%s3296_s1 + $0x4] sm:$0xf]  ;;  %v1936_v44 = vld [vmem:[%s3296_s1 + $0x10] sm:$0xf0]  ;;  %v50_v47 = vpack.c.bf16 %v49_v38, %v48_v35 }
  0x11   :  { %199 = vmatpush.bf16.msra.mxu3 %v1963_v24  ;;  %184 = vmatpush.bf16.msra.mxu2 %v1975_v30  ;;  %v1942_v45 = vld [vmem:[%s3296_s1 + $0x8] sm:$0xf]  ;;  %v2736_v46 = vld [vmem:[%s3296_s1 + $0x14] sm:$0xf0]  ;;  %v1935_v48 = vor.u32 %v2735_v41, %v1934_v40  ;;  %v1939_v49 = vor.u32 %v2733_v43, %v1936_v44  ;;  %v2002_v51 = vld [vmem:[%s3297_s2] sm:$0xf] }
  0x12   :  { %v1943_v50 = vor.u32 %v2736_v46, %v1942_v45  ;;  %v2750_v52 = vld [vmem:[%s3297_s2 + $0x8] sm:$0xf0]  ;;  %v2749_v53 = vld [vmem:[%s3297_s2 + $0x4] sm:$0xf]  ;;  %v2004_v55 = vld [vmem:[%s3297_s2 + $0xc] sm:$0xf0] }
  0x13   :  { %157 = vmatpush.bf16.msra.mxu0 %v1951_v36  ;;  %v2003_v54 = vor.u32 %v2750_v52, %v2002_v51  ;;  %v2007_v56 = vor.u32 %v2749_v53, %v2004_v55  ;;  %v2010_v57 = vld [vmem:[%s3297_s2 + $0x8] sm:$0xf]  ;;  %v2751_v58 = vld [vmem:[%s3297_s2 + $0x10] sm:$0xf0]  ;;  %v2759_v60 = vld [vmem:[%s3299_s4 + $0x38] sm:$0xff]  ;;  %vm576_vm8 = vcmask 125952  }
  0x14   :  { %171 = vmatpush.bf16.msra.mxu1 %v1955_v39  ;;  %v2011_v59 = vor.u32 %v2751_v58, %v2010_v57  ;;  %v2297_v61 = vld [vmem:[#allocation3 + $0x150] sm:$0xf]  ;;  %v2825_v62 = vld [vmem:[#allocation3 + $0x164] sm:$0xf0]  ;;  %v2273_v63 = vld [vmem:[#allocation3 + $0x120] sm:$0xf] }
  0x15   :  { %200 = vmatpush.bf16.msra.mxu3 %v1947_v37  ;;  %185 = vmatpush.bf16.msra.mxu2 %v1959_v42  ;;  %v2758_v0 = vld [vmem:[%s3299_s4 + $0x30] sm:$0xff]  ;;  %v2298_v1 = vor.u32 %v2825_v62, %v2297_v61  ;;  %v2819_v2 = vld [vmem:[#allocation3 + $0x134] sm:$0xf0]  ;;  %v2813_v7 = vld [vmem:[#allocation3 + $0x104] sm:$0xf0]  ;;  %s1919_s13 = sshll.u32 %s3302_s7, 4  ;;  %s1920_s13 = int_to_ptr.hbm [resolvable:$true] %s1919_s13 }
  0x16   :  { %v2767_v3 = vld [vmem:[%s3299_s4 + $0x78] sm:$0xff]  ;;  %v2274_v4 = vor.u32 %v2819_v2, %v2273_v63  ;;  %v2766_v5 = vld [vmem:[%s3299_s4 + $0x70] sm:$0xff]  ;;  %v2757_v8 = vld [vmem:[%s3299_s4 + $0x28] sm:$0xff]  ;;  %s2992_s5 = smov 768   ;;  %s2993_s14 = smov 48  }
  0x17   :  { %158 = vmatpush.bf16.msra.mxu0 %v1935_v48  ;;  %v2249_v6 = vld [vmem:[#allocation3 + $0xf0] sm:$0xf]  ;;  %v2765_v10 = vld [vmem:[%s3299_s4 + $0x68] sm:$0xff]  ;;  %v2225_v11 = vld [vmem:[#allocation3 + $0xc0] sm:$0xf] }
  0x18   :  { %1999 = vmatmul.msk.bf16.vlgmr.msra.gmra.mxu3 %vm147_vm0, %v50_v47  ;;  %172 = vmatpush.bf16.msra.mxu1 %v1939_v49  ;;  %v2250_v9 = vor.u32 %v2813_v7, %v2249_v6  ;;  %v2807_v12 = vld [vmem:[#allocation3 + $0xd4] sm:$0xf0]  ;;  %v2756_v14 = vld [vmem:[%s3299_s4 + $0x20] sm:$0xff]  ;;  %v2201_v17 = vld [vmem:[#allocation3 + $0x90] sm:$0xf] }
  0x19   :  { %186 = vmatpush.bf16.msra.mxu2 %v1943_v50  ;;  %532 = vmatpush.bf16.msrb.mxu3 %v2759_v60  ;;  %v2775_v13 = vld [vmem:[%s3299_s4 + $0xb8] sm:$0xff]  ;;  %v2226_v15 = vor.u32 %v2807_v12, %v2225_v11  ;;  %v2764_v16 = vld [vmem:[%s3299_s4 + $0x60] sm:$0xff]  ;;  %v2801_v18 = vld [vmem:[#allocation3 + $0xa4] sm:$0xf0] }
  0x1a   :  { %1996 = vmatmul.msk.bf16.vlgmr.msra.gmra.mxu0 %vm147_vm0, %v50_v47  ;;  %v2755_v19 = vld [vmem:[%s3299_s4 + $0x18] sm:$0xff]  ;;  %v2202_v20 = vor.u32 %v2801_v18, %v2201_v17  ;;  %v2177_v22 = vld [vmem:[#allocation3 + $0x60] sm:$0xf]  ;;  %v2754_v24 = vld [vmem:[%s3299_s4 + $0x10] sm:$0xff] }
  0x1b   :  { %1997 = vmatmul.msk.bf16.vlgmr.msra.gmra.mxu1 %vm147_vm0, %v50_v47  ;;  %239 = vmatpush.bf16.msrb.mxu0 %v2003_v54  ;;  %v2763_v21 = vld [vmem:[%s3299_s4 + $0x58] sm:$0xff]  ;;  %v2762_v27 = vld [vmem:[%s3299_s4 + $0x50] sm:$0xff]  ;;  %v2789_v29 = vld [vmem:[#allocation3 + $0x44] sm:$0xf0] }
  0x1c   :  { %1998 = vmatmul.msk.bf16.vlgmr.msra.gmra.mxu2 %vm147_vm0, %v50_v47  ;;  %253 = vmatpush.bf16.msrb.mxu1 %v2007_v56  ;;  %v2795_v23 = vld [vmem:[#allocation3 + $0x74] sm:$0xf0]  ;;  %v2153_v28 = vld [vmem:[#allocation3 + $0x30] sm:$0xf]  ;;  %v2753_v30 = vld [vmem:[%s3299_s4 + $0x8] sm:$0xff] }
  0x1d   :  { %267 = vmatpush.bf16.msrb.mxu2 %v2011_v59  ;;  %533 = vmatpush.bf16.msrb.mxu3 %v2758_v0  ;;  %v2178_v26 = vor.u32 %v2795_v23, %v2177_v22  ;;  %v2154_v31 = vor.u32 %v2789_v29, %v2153_v28  ;;  %v2489_v32 = vld [vmem:[#allocation3 + $0x2d0] sm:$0xf]  ;;  %v2873_v33 = vld [vmem:[#allocation3 + $0x2e4] sm:$0xf0]  ;;  %v2752_v34 = vld [vmem:[%s3299_s4] sm:$0xff] }
  0x1e   :  { %v2129_v35 = vld [vmem:[#allocation3] sm:$0xf]  ;;  %v2783_v36 = vld [vmem:[#allocation3 + $0x14] sm:$0xf0]  ;;  %v2822_v37 = vld [vmem:[#allocation3 + $0x154] sm:$0xf]  ;;  %v2490_v40 = vor.u32 %v2873_v33, %v2489_v32 }
  0x1f   :  { %546 = vmatpush.bf16.msra.mxu0 %v2767_v3  ;;  %v2299_v38 = vld [vmem:[#allocation3 + $0x168] sm:$0xf0]  ;;  %v2130_v42 = vor.u32 %v2783_v36, %v2129_v35  ;;  %v2465_v43 = vld [vmem:[#allocation3 + $0x2a0] sm:$0xf]  ;;  %v2867_v44 = vld [vmem:[#allocation3 + $0x2b4] sm:$0xf0] }
  0x20   :  { %560 = vmatpush.bf16.msra.mxu1 %v2775_v13  ;;  %v2302_v45 = vor.u32 %v2822_v37, %v2299_v38  ;;  %v2466_v46 = vor.u32 %v2867_v44, %v2465_v43  ;;  %v2774_v47 = vld [vmem:[%s3299_s4 + $0xb0] sm:$0xff]  ;;  %v2761_v49 = vld [vmem:[%s3299_s4 + $0x48] sm:$0xff]  ;;  %v2816_v51 = vld [vmem:[#allocation3 + $0x124] sm:$0xf] }
  0x21   :  { %1529 = vmatpush.bf16.msra.mxu2 %v2298_v1  ;;  %534 = vmatpush.bf16.msrb.mxu3 %v2757_v8  ;;  %v2441_v48 = vld [vmem:[#allocation3 + $0x270] sm:$0xf]  ;;  %v2861_v50 = vld [vmem:[#allocation3 + $0x284] sm:$0xf0]  ;;  %v2275_v53 = vld [vmem:[#allocation3 + $0x138] sm:$0xf0] }
  0x22   :  { %v2442_v52 = vor.u32 %v2861_v50, %v2441_v48  ;;  %v2278_v54 = vor.u32 %v2816_v51, %v2275_v53  ;;  %v2773_v55 = vld [vmem:[%s3299_s4 + $0xa8] sm:$0xff]  ;;  %v2417_v56 = vld [vmem:[#allocation3 + $0x240] sm:$0xf]  ;;  %v2855_v57 = vld [vmem:[#allocation3 + $0x254] sm:$0xf0] }
  0x23   :  { %547 = vmatpush.bf16.msra.mxu0 %v2766_v5  ;;  %v2760_v58 = vld [vmem:[%s3299_s4 + $0x40] sm:$0xff]  ;;  %v2418_v59 = vor.u32 %v2855_v57, %v2417_v56  ;;  %v2681_v60 = vld [vmem:[#allocation3 + $0x450] sm:$0xf]  ;;  %v2921_v61 = vld [vmem:[#allocation3 + $0x464] sm:$0xf0] }
  0x24   :  { %561 = vmatpush.bf16.msra.mxu1 %v2774_v47  ;;  %v2682_v62 = vor.u32 %v2921_v61, %v2681_v60  ;;  %v2810_v63 = vld [vmem:[#allocation3 + $0xf4] sm:$0xf]  ;;  %v2251_v0 = vld [vmem:[#allocation3 + $0x108] sm:$0xf0]  ;;  %v2772_v2 = vld [vmem:[%s3299_s4 + $0xa0] sm:$0xff] }
  0x25   :  { %1530 = vmatpush.bf16.msra.mxu2 %v2274_v4  ;;  %535 = vmatpush.bf16.msrb.mxu3 %v2756_v14  ;;  %v2254_v1 = vor.u32 %v2810_v63, %v2251_v0  ;;  %v2393_v3 = vld [vmem:[#allocation3 + $0x210] sm:$0xf]  ;;  %v2849_v4 = vld [vmem:[#allocation3 + $0x224] sm:$0xf0]  ;;  %v2657_v6 = vld [vmem:[#allocation3 + $0x420] sm:$0xf] }
  0x26   :  { %v2394_v5 = vor.u32 %v2849_v4, %v2393_v3  ;;  %v2915_v7 = vld [vmem:[#allocation3 + $0x434] sm:$0xf0]  ;;  %v2804_v8 = vld [vmem:[#allocation3 + $0xc4] sm:$0xf]  ;;  %v2369_v13 = vld [vmem:[#allocation3 + $0x1e0] sm:$0xf] }
  0x27   :  { %548 = vmatpush.bf16.msra.mxu0 %v2765_v10  ;;  %v2227_v10 = vld [vmem:[#allocation3 + $0xd8] sm:$0xf0]  ;;  %v2843_v14 = vld [vmem:[#allocation3 + $0x1f4] sm:$0xf0]  ;;  %v2909_v17 = vld [vmem:[#allocation3 + $0x404] sm:$0xf0] }
  0x28   :  { %562 = vmatpush.bf16.msra.mxu1 %v2773_v55  ;;  %v2230_v11 = vor.u32 %v2804_v8, %v2227_v10  ;;  %v2771_v12 = vld [vmem:[%s3299_s4 + $0x98] sm:$0xff]  ;;  %v2798_v18 = vld [vmem:[#allocation3 + $0x94] sm:$0xf]  ;;  %v2203_v22 = vld [vmem:[#allocation3 + $0xa8] sm:$0xf0] }
  0x29   :  { %1531 = vmatpush.bf16.msra.mxu2 %v2250_v9  ;;  %536 = vmatpush.bf16.msrb.mxu3 %v2755_v19  ;;  %v2658_v9 = vor.u32 %v2915_v7, %v2657_v6  ;;  %v2206_v23 = vor.u32 %v2798_v18, %v2203_v22  ;;  %v2609_v28 = vld [vmem:[#allocation3 + $0x3c0] sm:$0xf]  ;;  %v2903_v29 = vld [vmem:[#allocation3 + $0x3d4] sm:$0xf0]  ;;  %v2179_v32 = vld [vmem:[#allocation3 + $0x78] sm:$0xf0] }
  0x2a   :  { %v280_v33 = vld [vmem:[%s3298_s3] sm:$0x7]  ;;  %v2769_v35 = vld [vmem:[%s3299_s4 + $0x88] sm:$0xff]  ;;  %v2831_v37 = vld [vmem:[#allocation3 + $0x194] sm:$0xf0] }
  0x2b   :  { %549 = vmatpush.bf16.msra.mxu0 %v2764_v16  ;;  %v2633_v16 = vld [vmem:[#allocation3 + $0x3f0] sm:$0xf]  ;;  %v2321_v36 = vld [vmem:[#allocation3 + $0x180] sm:$0xf]  ;;  %v2155_v44 = vld [vmem:[#allocation3 + $0x48] sm:$0xf0] }
  0x2c   :  { %563 = vmatpush.bf16.msra.mxu1 %v2772_v2  ;;  %v2561_v50 = vld [vmem:[#allocation3 + $0x360] sm:$0xf]  ;;  %v2891_v51 = vld [vmem:[#allocation3 + $0x374] sm:$0xf0] }
  0x2d   :  { %1532 = vmatpush.bf16.msra.mxu2 %v2226_v15  ;;  %537 = vmatpush.bf16.msrb.mxu3 %v2754_v24  ;;  %v2370_v15 = vor.u32 %v2843_v14, %v2369_v13  ;;  %v2770_v24 = vld [vmem:[%s3299_s4 + $0x90] sm:$0xff]  ;;  %v2562_v53 = vor.u32 %v2891_v51, %v2561_v50  ;;  %v2513_v4 = vld [vmem:[#allocation3 + $0x300] sm:$0xf] }
  0x2e   :  { %v2826_v50 = vld [vmem:[#allocation3 + $0x16c] sm:$0xf0] }
  0x2f   :  { %550 = vmatpush.bf16.msra.mxu0 %v2763_v21  ;;  %v2634_v21 = vor.u32 %v2909_v17, %v2633_v16 }
  0x30   :  { %564 = vmatpush.bf16.msra.mxu1 %v2771_v12 }
  0x31   :  { %1533 = vmatpush.bf16.msra.mxu2 %v2202_v20  ;;  %538 = vmatpush.bf16.msrb.mxu3 %v2753_v30  ;;  %v2792_v30 = vld [vmem:[#allocation3 + $0x64] sm:$0xf] }
  0x33   :  { %551 = vmatpush.bf16.msra.mxu0 %v2762_v27 }
  0x34   :  { %565 = vmatpush.bf16.msra.mxu1 %v2770_v24 }
  0x35   :  { %1534 = vmatpush.bf16.msra.mxu2 %v2178_v26  ;;  %539 = vmatpush.bf16.msrb.mxu3 %v2752_v34  ;;  %v2837_v26 = vld [vmem:[#allocation3 + $0x1c4] sm:$0xf0]  ;;  %v2182_v34 = vor.u32 %v2792_v30, %v2179_v32 }
  0x37   :  { %552 = vmatpush.bf16.msra.mxu0 %v2761_v49  ;;  %v2768_v49 = vld [vmem:[%s3299_s4 + $0x80] sm:$0xff] }
  0x38   :  { %566 = vmatpush.bf16.msra.mxu1 %v2769_v35  ;;  %v2918_v35 = vld [vmem:[#allocation3 + $0x454] sm:$0xf] }
  0x39   :  { %1535 = vmatpush.bf16.msra.mxu2 %v2154_v31  ;;  %1543 = vmatpush.bf16.msra.mxu3 %v2490_v40  ;;  %v2610_v31 = vor.u32 %v2903_v29, %v2609_v28  ;;  %v2585_v40 = vld [vmem:[#allocation3 + $0x390] sm:$0xf] }
  0x3b   :  { %553 = vmatpush.bf16.msra.mxu0 %v2760_v58  ;;  %v2537_v58 = vld [vmem:[#allocation3 + $0x330] sm:$0xf] }
  0x3c   :  { %567 = vmatpush.bf16.msra.mxu1 %v2768_v49  ;;  %v2305_v49 = vld [vmem:[#allocation3 + $0x158] sm:$0xf] }
  0x3d   :  { %1536 = vmatpush.bf16.msra.mxu2 %v2130_v42  ;;  %1544 = vmatpush.bf16.msra.mxu3 %v2466_v46  ;;  %v2786_v42 = vld [vmem:[#allocation3 + $0x34] sm:$0xf] }
  0x3e   :  { %v2158_v46 = vor.u32 %v2786_v42, %v2155_v44 }
  0x41   :  { %1545 = vmatpush.bf16.msra.mxu3 %v2442_v52  ;;  %v2780_v52 = vld [vmem:[#allocation3 + $0x4] sm:$0xf] }
  0x45   :  { %1546 = vmatpush.bf16.msra.mxu3 %v2418_v59  ;;  %v2885_v59 = vld [vmem:[#allocation3 + $0x344] sm:$0xf0] }
  0x46   :  { %v2538_v60 = vor.u32 %v2885_v59, %v2537_v58  ;;  %v2306_v59 = vor.u32 %v2826_v50, %v2305_v49  ;;  %v2805_v50 = vld [vmem:[#allocation3 + $0xcc] sm:$0xf] }
  0x49   :  { %1547 = vmatpush.bf16.msra.mxu3 %v2394_v5  ;;  %v2879_v5 = vld [vmem:[#allocation3 + $0x314] sm:$0xf0] }
  0x4a   :  { %v2514_v7 = vor.u32 %v2879_v5, %v2513_v4  ;;  %v2257_v4 = vld [vmem:[#allocation3 + $0xf8] sm:$0xf]  ;;  %v2814_v5 = vld [vmem:[#allocation3 + $0x10c] sm:$0xf0] }
  0x4d   :  { %1548 = vmatpush.bf16.msra.mxu3 %v2370_v15 }
  0x97   :  { %v3223_v19 = vpop.f32.mrf.mxu0 }
  0x98   :  { %v3225_v20 = vpop.f32.mrf.mxu1 }
  0x9b   :  { %v202_v25 = vpop.f32.mrf.mxu3 }
  0x9f   :  { %v188_v38 = vpop.f32.mrf.mxu2  ;;  %v162_v47 = vpop.f32.mrf.mxu0 }
  0xa0   :  { %v176_v48 = vpop.f32.mrf.mxu1 }
  0xa3   :  { %v204_v39 = vpop.f32.mrf.mxu3 }
  0xa4   :  { %v207_v41 = vpack.c.bf16 %v204_v39, %v202_v25  ;;  %v2345_v25 = vld [vmem:[#allocation3 + $0x1b0] sm:$0xf]  ;;  %v2322_v39 = vor.u32 %v2831_v37, %v2321_v36  ;;  %v2683_v36 = vld [vmem:[#allocation3 + $0x468] sm:$0xf0] }
  0xa5   :  { %v2346_v27 = vor.u32 %v2837_v26, %v2345_v25  ;;  %v2686_v42 = vor.u32 %v2918_v35, %v2683_v36  ;;  %v2790_v35 = vld [vmem:[#allocation3 + $0x4c] sm:$0xf0] }
  0xa6   :  { %2012 = vmatmul.msk.bf16.vlgmr.msrb.gmra.mxu0 %vm228_vm1, %v207_v41  ;;  %2013 = vmatmul.msk.bf16.vlgmr.msrb.gmra.mxu1 %vm228_vm1, %v207_v41 }
  0xa7   :  { %2014 = vmatmul.msk.bf16.vlgmr.msrb.gmra.mxu2 %vm228_vm1, %v207_v41  ;;  %1557 = vmatpush.bf16.msrb.mxu0 %v2682_v62  ;;  %v2897_v41 = vld [vmem:[#allocation3 + $0x3a4] sm:$0xf0]  ;;  %v190_v61 = vpop.f32.mrf.mxu2 }
  0xa8   :  { %1585 = vmatpush.bf16.msrb.mxu2 %v2302_v45  ;;  %1549 = vmatpush.bf16.msra.mxu3 %v2346_v27  ;;  %v2586_v43 = vor.u32 %v2897_v41, %v2585_v40  ;;  %v281_v45 = vunpack.c.l.bf16 %v280_v33 }
  0xaa   :  { %v283_v55 = vperm.slane %v281_v45, 0  ;;  %v284_v56 = vperm.slane %v281_v45, 2  ;;  %v285_v6 = vperm.slane %v281_v45, 4 }
  0xab   :  { %1558 = vmatpush.bf16.msrb.mxu0 %v2658_v9 }
  0xac   :  { %1586 = vmatpush.bf16.msrb.mxu2 %v2278_v54  ;;  %1550 = vmatpush.bf16.msra.mxu3 %v2322_v39  ;;  %v2131_v54 = vld [vmem:[#allocation3 + $0x18] sm:$0xf0]  ;;  %v289_v62 = vperm.slane %v283_v55, 0  ;;  %v290_v63 = vperm.slane %v284_v56, 0  ;;  %v291_v12 = vperm.slane %v285_v6, 0 }
  0xad   :  { %v2134_v57 = vor.u32 %v2780_v52, %v2131_v54  ;;  %v2635_v54 = vld [vmem:[#allocation3 + $0x408] sm:$0xf0] }
  0xaf   :  { %1559 = vmatpush.bf16.msrb.mxu0 %v2634_v21 }
  0xb0   :  { %1587 = vmatpush.bf16.msrb.mxu2 %v2254_v1 }
  0xb3   :  { %1560 = vmatpush.bf16.msrb.mxu0 %v2610_v31 }
  0xb4   :  { %1588 = vmatpush.bf16.msrb.mxu2 %v2230_v11 }
  0xb7   :  { %1561 = vmatpush.bf16.msrb.mxu0 %v2586_v43  ;;  %v2912_v43 = vld [vmem:[#allocation3 + $0x424] sm:$0xf] }
  0xb8   :  { %1589 = vmatpush.bf16.msrb.mxu2 %v2206_v23 }
  0xbb   :  { %1562 = vmatpush.bf16.msrb.mxu0 %v2562_v53  ;;  %v2906_v53 = vld [vmem:[#allocation3 + $0x3f4] sm:$0xf] }
  0xbc   :  { %1590 = vmatpush.bf16.msrb.mxu2 %v2182_v34 }
  0xbf   :  { %1563 = vmatpush.bf16.msrb.mxu0 %v2538_v60 }
  0xc0   :  { %1591 = vmatpush.bf16.msrb.mxu2 %v2158_v46 }
  0xc3   :  { %1564 = vmatpush.bf16.msrb.mxu0 %v2514_v7  ;;  %v2894_v7 = vld [vmem:[#allocation3 + $0x394] sm:$0xf] }
  0xc4   :  { %1592 = vmatpush.bf16.msrb.mxu2 %v2134_v57 }
 0x123   :  { %v241_v0 = vpop.f32.mrf.mxu0  ;;  %v255_v1 = vpop.f32.mrf.mxu1 }
 0x124   :  { %v274_v2 = vadd.f32 %v241_v0, %v3223_v19  ;;  %v275_v3 = vadd.f32 %v255_v1, %v3225_v20  ;;  %v2638_v0 = vor.u32 %v2906_v53, %v2635_v54  ;;  %v2900_v1 = vld [vmem:[#allocation3 + $0x3c4] sm:$0xf]  ;;  %v2799_v53 = vld [vmem:[#allocation3 + $0x9c] sm:$0xf]  ;;  %v2211_v54 = vld [vmem:[#allocation3 + $0xb0] sm:$0xf0] }
 0x126   :  { %v292_v8 = vadd.f32 %v289_v62, %v274_v2  ;;  %v293_v9 = vadd.f32 %v290_v63, %v275_v3  ;;  %v2611_v2 = vld [vmem:[#allocation3 + $0x3d8] sm:$0xf0] }
 0x127   :  { %v2614_v6 = vor.u32 %v2900_v1, %v2611_v2  ;;  %v2505_v1 = vld [vmem:[#allocation3 + $0x2e0] sm:$0xf]  ;;  %v2875_v2 = vld [vmem:[#allocation3 + $0x2f4] sm:$0xf0] }
 0x128   :  { %vm298_vm2 = vcmp.ge.f32.partialorder %v292_v8, 0.0  ;;  %v304_v10 = vmul.f32 0.01, %v292_v8  ;;  %vm299_vm3 = vcmp.ge.f32.partialorder %v293_v9, 0.0  ;;  %v305_v11 = vmul.f32 0.01, %v293_v9 }
 0x12a   :  { %v310_v13 = vsel %vm298_vm2, %v292_v8, %v304_v10  ;;  %v311_v14 = vsel %vm299_vm3, %v293_v9, %v305_v11  ;;  %v269_v15 = vpop.f32.mrf.mxu2  ;;  %v2587_v8 = vld [vmem:[#allocation3 + $0x3a8] sm:$0xf0]  ;;  %v2258_v9 = vor.u32 %v2814_v5, %v2257_v4  ;;  %v2506_v4 = vor.u32 %v2875_v2, %v2505_v1  ;;  %v2481_v5 = vld [vmem:[#allocation3 + $0x2b0] sm:$0xf]  ;;  %v2475_v1 = vld [vmem:[#allocation3 + $0x2c0] sm:$0xf0] }
 0x12b   :  { %v316_v16 = vpack.c.bf16 %v311_v14, %v310_v13  ;;  %v276_v17 = vadd.f32 %v269_v15, %v188_v38  ;;  %v243_v18 = vpop.f32.mrf.mxu0  ;;  %v257_v19 = vpop.f32.mrf.mxu1  ;;  %v2808_v13 = vld [vmem:[#allocation3 + $0xdc] sm:$0xf0] }
 0x12c   :  { %v277_v20 = vadd.f32 %v243_v18, %v162_v47  ;;  %v278_v21 = vadd.f32 %v257_v19, %v176_v48  ;;  %v2659_v47 = vld [vmem:[#allocation3 + $0x438] sm:$0xf0]  ;;  %v2888_v19 = vld [vmem:[#allocation3 + $0x364] sm:$0xf] }
 0x12d   :  { %320 = vst [vmem:[#allocation2] sm:$0xff] %v316_v16  ;;  %v294_v22 = vadd.f32 %v291_v12, %v276_v17  ;;  %v376_v37 = vunpack.c.l.b16 %v316_v16  ;;  %v377_v40 = vunpack.c.h.b16 %v316_v16  ;;  %v2662_v52 = vor.u32 %v2912_v43, %v2659_v47  ;;  %v2811_v47 = vld [vmem:[#allocation3 + $0xfc] sm:$0xf] }
 0x12e   :  { %v295_v23 = vadd.f32 %v289_v62, %v277_v20  ;;  %v296_v24 = vadd.f32 %v290_v63, %v278_v21  ;;  %v2820_v62 = vld [vmem:[#allocation3 + $0x13c] sm:$0xf0]  ;;  %v2590_v16 = vor.u32 %v2894_v7, %v2587_v8  ;;  %v2563_v20 = vld [vmem:[#allocation3 + $0x378] sm:$0xf0] }
 0x12f   :  { %vm300_vm4 = vcmp.ge.f32.partialorder %v294_v22, 0.0  ;;  %v306_v25 = vmul.f32 0.01, %v294_v22  ;;  %v2457_v8 = vld [vmem:[#allocation3 + $0x280] sm:$0xf] }
 0x130   :  { %vm301_vm5 = vcmp.ge.f32.partialorder %v295_v23, 0.0  ;;  %v307_v26 = vmul.f32 0.01, %v295_v23  ;;  %vm302_vm6 = vcmp.ge.f32.partialorder %v296_v24, 0.0  ;;  %v308_v27 = vmul.f32 0.01, %v296_v24 }
 0x131   :  { %v312_v28 = vsel %vm300_vm4, %v294_v22, %v306_v25  ;;  %v2209_v22 = vld [vmem:[#allocation3 + $0x98] sm:$0xf]  ;;  %v2882_v25 = vld [vmem:[#allocation3 + $0x334] sm:$0xf] }
 0x132   :  { %v317_v29 = vpack.c.bf16 %v312_v28, %v312_v28  ;;  %v313_v30 = vsel %vm301_vm5, %v295_v23, %v307_v26  ;;  %v314_v31 = vsel %vm302_vm6, %v296_v24, %v308_v27  ;;  %v271_v32 = vpop.f32.mrf.mxu2  ;;  %v2802_v23 = vld [vmem:[#allocation3 + $0xac] sm:$0xf0]  ;;  %v2566_v24 = vor.u32 %v2888_v19, %v2563_v20  ;;  %v2539_v26 = vld [vmem:[#allocation3 + $0x348] sm:$0xf0]  ;;  %v2185_v28 = vld [vmem:[#allocation3 + $0x68] sm:$0xf] }
 0x133   :  { %v318_v33 = vpack.c.bf16 %v314_v31, %v313_v30  ;;  %v279_v34 = vadd.f32 %v271_v32, %v190_v61  ;;  %v2281_v61 = vld [vmem:[#allocation3 + $0x128] sm:$0xf]  ;;  %v2210_v27 = vor.u32 %v2802_v23, %v2209_v22  ;;  %v2542_v30 = vor.u32 %v2882_v25, %v2539_v26  ;;  %v2876_v31 = vld [vmem:[#allocation3 + $0x304] sm:$0xf]  ;;  %v2515_v32 = vld [vmem:[#allocation3 + $0x318] sm:$0xf0] }
 0x134   :  { %321 = vst [vmem:[#allocation2 + $0x8] sm:$0xf] %v317_v29  ;;  %v378_v55 = vunpack.c.l.b16 %v317_v29  ;;  %v2113_v57 = vld [vmem:[#allocation2] sm:$0xf]  ;;  %v2282_v3 = vor.u32 %v2820_v62, %v2281_v61  ;;  %v2776_v14 = vld [vmem:[#allocation2 + $0x4] sm:$0xf]  ;;  %v2518_v36 = vor.u32 %v2876_v31, %v2515_v32 }
 0x135   :  { %322 = vst [vmem:[#allocation2 + $0x10] sm:$0xff] %v318_v33  ;;  %v297_v38 = vadd.f32 %v291_v12, %v279_v34  ;;  %v379_v39 = vunpack.c.l.b16 %v318_v33  ;;  %v380_v41 = vunpack.c.h.b16 %v318_v33  ;;  %v2233_v12 = vld [vmem:[#allocation3 + $0xc8] sm:$0xf]  ;;  %v2796_v29 = vld [vmem:[#allocation3 + $0x7c] sm:$0xf0] }
 0x136   :  { %v2234_v21 = vor.u32 %v2808_v13, %v2233_v12  ;;  %v2186_v33 = vor.u32 %v2796_v29, %v2185_v28  ;;  %v2161_v34 = vld [vmem:[#allocation3 + $0x38] sm:$0xf]  ;;  %v2163_v61 = vld [vmem:[#allocation3 + $0x50] sm:$0xf0]  ;;  %v2857_v12 = vld [vmem:[#allocation3 + $0x264] sm:$0xf0] }
 0x137   :  { %vm303_vm7 = vcmp.ge.f32.partialorder %v297_v38, 0.0  ;;  %v309_v44 = vmul.f32 0.01, %v297_v38  ;;  %v382_v45 = vpack.c.b16 %v379_v39, %v376_v37  ;;  %v383_v46 = vpack.c.b16 %v380_v41, %v377_v40  ;;  %v2784_v39 = vld [vmem:[#allocation3 + $0x1c] sm:$0xf0] }
 0x138   :  { %v2162_v37 = vor.u32 %v2790_v35, %v2161_v34  ;;  %v2823_v40 = vld [vmem:[#allocation3 + $0x15c] sm:$0xf]  ;;  %v2307_v41 = vld [vmem:[#allocation3 + $0x170] sm:$0xf0]  ;;  %v2385_v19 = vld [vmem:[#allocation3 + $0x1f0] sm:$0xf] }
 0x139   :  { %v315_v48 = vsel %vm303_vm7, %v297_v38, %v309_v44  ;;  %540 = vmatmul.bf16.vlgmr.msrb.gmra.mxu3 %v382_v45  ;;  %554 = vmatmul.bf16.vlgmr.msra.gmra.mxu0 %v383_v46  ;;  %v2137_v38 = vld [vmem:[#allocation3 + $0x8] sm:$0xf]  ;;  %v2310_v43 = vor.u32 %v2823_v40, %v2307_v41  ;;  %v2817_v44 = vld [vmem:[#allocation3 + $0x12c] sm:$0xf]  ;;  %v2283_v45 = vld [vmem:[#allocation3 + $0x140] sm:$0xf0] }
 0x13a   :  { %v319_v51 = vpack.c.bf16 %v315_v48, %v315_v48  ;;  %1613 = vmatpush.bf16.msrb.mxu3 %v2686_v42  ;;  %v2138_v42 = vor.u32 %v2784_v39, %v2137_v38  ;;  %v2286_v46 = vor.u32 %v2817_v44, %v2283_v45  ;;  %v2259_v48 = vld [vmem:[#allocation3 + $0x110] sm:$0xf0]  ;;  %v2845_v20 = vld [vmem:[#allocation3 + $0x204] sm:$0xf0]  ;;  %v2361_v22 = vld [vmem:[#allocation3 + $0x1c0] sm:$0xf] }
 0x13b   :  { %v2121_v15 = vld [vmem:[#allocation2 + $0x8] sm:$0xf]  ;;  %v2262_v49 = vor.u32 %v2811_v47, %v2259_v48  ;;  %v2839_v23 = vld [vmem:[#allocation3 + $0x1d4] sm:$0xf0]  ;;  %v2337_v25 = vld [vmem:[#allocation3 + $0x190] sm:$0xf] }
 0x13c   :  { %323 = vst [vmem:[#allocation2 + $0x18] sm:$0xf] %v319_v51  ;;  %v381_v56 = vunpack.c.l.b16 %v319_v51  ;;  %v2778_v58 = vld [vmem:[#allocation2 + $0xc] sm:$0xf0]  ;;  %v2115_v10 = vld [vmem:[#allocation2 + $0x10] sm:$0xf0] }
 0x13d   :  { %v3241_v60 = vor.u32 %v2778_v58, %v2113_v57  ;;  %v3244_v17 = vor.u32 %v2776_v14, %v2115_v10  ;;  %v2235_v51 = vld [vmem:[#allocation3 + $0xe0] sm:$0xf0]  ;;  %v2409_v14 = vld [vmem:[#allocation3 + $0x220] sm:$0xf]  ;;  %v2833_v26 = vld [vmem:[#allocation3 + $0x1a4] sm:$0xf0] }
 0x13e   :  { %1614 = vmatpush.bf16.msrb.mxu3 %v2662_v52  ;;  %v384_v63 = vpack.c.b16 %v381_v56, %v378_v55  ;;  %v2238_v52 = vor.u32 %v2805_v50, %v2235_v51  ;;  %v2214_v55 = vor.u32 %v2799_v53, %v2211_v54  ;;  %v2793_v56 = vld [vmem:[#allocation3 + $0x6c] sm:$0xf]  ;;  %v2187_v57 = vld [vmem:[#allocation3 + $0x80] sm:$0xf0]  ;;  %v2699_v28 = vld [vmem:[#allocation3 + $0x478] sm:$0xf0]  ;;  %v2338_v29 = vor.u32 %v2833_v26, %v2337_v25 }
 0x13f   :  { %1537 = vmatmul.bf16.vlgmr.msra.gmra.mxu2 %v3241_v60  ;;  %v2190_v58 = vor.u32 %v2793_v56, %v2187_v57  ;;  %v2914_v31 = vld [vmem:[#allocation3 + $0x434] sm:$0xf]  ;;  %v2675_v32 = vld [vmem:[#allocation3 + $0x448] sm:$0xf0]  ;;  %v2927_v34 = vld [vmem:[#allocation3 + $0x494] sm:$0xf0] }
 0x140   :  { %568 = vmatmul.bf16.vlgmr.msra.gmra.mxu1 %v384_v63  ;;  %1641 = vmatpush.bf16.msra.mxu2 %v2306_v59  ;;  %v2787_v59 = vld [vmem:[#allocation3 + $0x3c] sm:$0xf]  ;;  %v2781_v63 = vld [vmem:[#allocation3 + $0xc] sm:$0xf]  ;;  %v2908_v35 = vld [vmem:[#allocation3 + $0x404] sm:$0xf]  ;;  %v2678_v41 = vor.u32 %v2914_v31, %v2675_v32 }
 0x141   :  { %v2166_v62 = vor.u32 %v2787_v59, %v2163_v61  ;;  %v2870_v38 = vld [vmem:[#allocation3 + $0x2d4] sm:$0xf]  ;;  %v2491_v39 = vld [vmem:[#allocation3 + $0x2e8] sm:$0xf0]  ;;  %v2924_v40 = vld [vmem:[#allocation3 + $0x484] sm:$0xf] }
 0x142   :  { %1615 = vmatpush.bf16.msrb.mxu3 %v2638_v0  ;;  %v2139_v0 = vld [vmem:[#allocation3 + $0x20] sm:$0xf0]  ;;  %v2713_v44 = vld [vmem:[#allocation3 + $0x488] sm:$0xf]  ;;  %v2928_v45 = vld [vmem:[#allocation3 + $0x49c] sm:$0xf0] }
 0x143   :  { %v2779_v11 = vld [vmem:[#allocation2 + $0x14] sm:$0xf0]  ;;  %v2714_v47 = vor.u32 %v2928_v45, %v2713_v44  ;;  %v2871_v50 = vld [vmem:[#allocation3 + $0x2dc] sm:$0xf]  ;;  %v2864_v54 = vld [vmem:[#allocation3 + $0x2a4] sm:$0xf] }
 0x144   :  { %1642 = vmatpush.bf16.msra.mxu2 %v2282_v3  ;;  %v3246_v18 = vor.u32 %v2779_v11, %v2121_v15  ;;  %v2142_v3 = vor.u32 %v2781_v63, %v2139_v0  ;;  %v2433_v11 = vld [vmem:[#allocation3 + $0x250] sm:$0xf]  ;;  %v2851_v15 = vld [vmem:[#allocation3 + $0x234] sm:$0xf0]  ;;  %v2868_v59 = vld [vmem:[#allocation3 + $0x2bc] sm:$0xf0] }
 0x145   :  { %v2434_v13 = vor.u32 %v2857_v12, %v2433_v11  ;;  %v2497_v48 = vld [vmem:[#allocation3 + $0x2d8] sm:$0xf]  ;;  %v2865_v61 = vld [vmem:[#allocation3 + $0x2ac] sm:$0xf]  ;;  %v2603_v11 = vld [vmem:[#allocation3 + $0x3b8] sm:$0xf0] }
 0x146   :  { %1616 = vmatpush.bf16.msrb.mxu3 %v2614_v6  ;;  %v2869_v6 = vld [vmem:[#allocation3 + $0x2c4] sm:$0xf0]  ;;  %v2627_v63 = vld [vmem:[#allocation3 + $0x3e8] sm:$0xf0]  ;;  %v2478_v2 = vor.u32 %v2865_v61, %v2475_v1  ;;  %v2355_v61 = vld [vmem:[#allocation3 + $0x1d0] sm:$0xf0] }
 0x147   :  { %v2482_v7 = vor.u32 %v2869_v6, %v2481_v5  ;;  %v2579_v25 = vld [vmem:[#allocation3 + $0x388] sm:$0xf0]  ;;  %v2377_v45 = vld [vmem:[#allocation3 + $0x1e8] sm:$0xf]  ;;  %v2323_v1 = vld [vmem:[#allocation3 + $0x198] sm:$0xf0] }
 0x148   :  { %1643 = vmatpush.bf16.msra.mxu2 %v2258_v9  ;;  %v2863_v9 = vld [vmem:[#allocation3 + $0x294] sm:$0xf0] }
 0x149   :  { %1551 = vmatmul.bf16.vlgmr.msra.gmra.mxu3 %v3244_v17  ;;  %1565 = vmatmul.bf16.vlgmr.msrb.gmra.mxu0 %v3246_v18  ;;  %v2458_v10 = vor.u32 %v2863_v9, %v2457_v8  ;;  %v2862_v8 = vld [vmem:[#allocation3 + $0x28c] sm:$0xf0]  ;;  %v2859_v9 = vld [vmem:[#allocation3 + $0x27c] sm:$0xf] }
 0x14a   :  { %1617 = vmatpush.bf16.msrb.mxu3 %v2590_v16  ;;  %v2410_v16 = vor.u32 %v2851_v15, %v2409_v14  ;;  %v2852_v15 = vld [vmem:[#allocation3 + $0x244] sm:$0xf] }
 0x14c   :  { %1644 = vmatpush.bf16.msra.mxu2 %v2234_v21  ;;  %v2386_v21 = vor.u32 %v2845_v20, %v2385_v19 }
 0x14e   :  { %1618 = vmatpush.bf16.msrb.mxu3 %v2566_v24  ;;  %v2362_v24 = vor.u32 %v2839_v23, %v2361_v22  ;;  %v2856_v22 = vld [vmem:[#allocation3 + $0x25c] sm:$0xf0]  ;;  %v2853_v23 = vld [vmem:[#allocation3 + $0x24c] sm:$0xf] }
 0x14f   :  { %1593 = vmatmul.bf16.vlgmr.msrb.gmra.mxu2 %v3241_v60 }
 0x150   :  { %1645 = vmatpush.bf16.msra.mxu2 %v2210_v27  ;;  %v2920_v27 = vld [vmem:[#allocation3 + $0x464] sm:$0xf] }
 0x152   :  { %1619 = vmatpush.bf16.msrb.mxu3 %v2542_v30  ;;  %v2702_v30 = vor.u32 %v2920_v27, %v2699_v28  ;;  %v2427_v27 = vld [vmem:[#allocation3 + $0x260] sm:$0xf0] }
 0x153   :  { %v2430_v28 = vor.u32 %v2853_v23, %v2427_v27  ;;  %v2689_v23 = vld [vmem:[#allocation3 + $0x458] sm:$0xf]  ;;  %v2697_v27 = vld [vmem:[#allocation3 + $0x460] sm:$0xf] }
 0x154   :  { %1646 = vmatpush.bf16.msra.mxu2 %v2186_v33  ;;  %v2705_v33 = vld [vmem:[#allocation3 + $0x480] sm:$0xf] }
 0x156   :  { %1620 = vmatpush.bf16.msrb.mxu3 %v2518_v36  ;;  %v2651_v36 = vld [vmem:[#allocation3 + $0x418] sm:$0xf0] }
 0x157   :  { %v2654_v56 = vor.u32 %v2908_v35, %v2651_v36  ;;  %v2847_v35 = vld [vmem:[#allocation3 + $0x21c] sm:$0xf]  ;;  %v2884_v36 = vld [vmem:[#allocation3 + $0x344] sm:$0xf] }
 0x158   :  { %1647 = vmatpush.bf16.msra.mxu2 %v2162_v37  ;;  %v2706_v37 = vor.u32 %v2927_v34, %v2705_v33  ;;  %v2401_v33 = vld [vmem:[#allocation3 + $0x218] sm:$0xf]  ;;  %v2850_v34 = vld [vmem:[#allocation3 + $0x22c] sm:$0xf0] }
 0x159   :  { %1621 = vmatmul.bf16.vlgmr.msrb.gmra.mxu3 %v3246_v18 }
 0x15a   :  { %1578 = vmatpush.bf16.msrb.mxu1 %v2706_v37  ;;  %1690 = vmatpush.bf16.msra.mxu3 %v2714_v47  ;;  %v2555_v37 = vld [vmem:[#allocation3 + $0x358] sm:$0xf0]  ;;  %v2841_v47 = vld [vmem:[#allocation3 + $0x1ec] sm:$0xf] }
 0x15c   :  { %1648 = vmatpush.bf16.msra.mxu2 %v2138_v42  ;;  %v2494_v42 = vor.u32 %v2870_v38, %v2491_v39  ;;  %v2402_v38 = vor.u32 %v2850_v34, %v2401_v33  ;;  %v2403_v39 = vld [vmem:[#allocation3 + $0x230] sm:$0xf0] }
 0x15e   :  { %1599 = vmatpush.bf16.msra.mxu1 %v2494_v42  ;;  %v2371_v42 = vld [vmem:[#allocation3 + $0x1f8] sm:$0xf0] }
 0x15f   :  { %1649 = vmatmul.bf16.vlgmr.msra.gmra.mxu2 %v3241_v60 }
 0x160   :  { %1697 = vmatpush.bf16.msrb.mxu2 %v2310_v43  ;;  %v2707_v43 = vld [vmem:[#allocation3 + $0x498] sm:$0xf0] }
 0x164   :  { %1698 = vmatpush.bf16.msrb.mxu2 %v2286_v46  ;;  %v2710_v46 = vor.u32 %v2924_v40, %v2707_v43  ;;  %v2406_v40 = vor.u32 %v2847_v35, %v2403_v39  ;;  %v2558_v43 = vor.u32 %v2884_v36, %v2555_v37  ;;  %v2665_v35 = vld [vmem:[#allocation3 + $0x428] sm:$0xf]  ;;  %v2916_v36 = vld [vmem:[#allocation3 + $0x43c] sm:$0xf0]  ;;  %v2913_v37 = vld [vmem:[#allocation3 + $0x42c] sm:$0xf] }
 0x165   :  { %v2673_v39 = vld [vmem:[#allocation3 + $0x430] sm:$0xf] }
 0x166   :  { %1634 = vmatpush.bf16.msra.mxu0 %v2710_v46  ;;  %v2844_v46 = vld [vmem:[#allocation3 + $0x1fc] sm:$0xf0] }
 0x168   :  { %1699 = vmatpush.bf16.msrb.mxu2 %v2262_v49  ;;  %v2874_v49 = vld [vmem:[#allocation3 + $0x2ec] sm:$0xf0] }
 0x169   :  { %v2498_v51 = vor.u32 %v2874_v49, %v2497_v48  ;;  %v2878_v48 = vld [vmem:[#allocation3 + $0x314] sm:$0xf]  ;;  %v2531_v49 = vld [vmem:[#allocation3 + $0x328] sm:$0xf0] }
 0x16b   :  { %1655 = vmatpush.bf16.msrb.mxu0 %v2498_v51  ;;  %v2379_v51 = vld [vmem:[#allocation3 + $0x200] sm:$0xf0] }
 0x16c   :  { %1700 = vmatpush.bf16.msrb.mxu2 %v2238_v52  ;;  %v2499_v52 = vld [vmem:[#allocation3 + $0x2f0] sm:$0xf0] }
 0x16d   :  { %v2502_v53 = vor.u32 %v2871_v50, %v2499_v52  ;;  %v2378_v50 = vor.u32 %v2844_v46, %v2377_v45  ;;  %v2382_v52 = vor.u32 %v2841_v47, %v2379_v51  ;;  %v2910_v45 = vld [vmem:[#allocation3 + $0x40c] sm:$0xf0]  ;;  %v2907_v46 = vld [vmem:[#allocation3 + $0x3fc] sm:$0xf]  ;;  %v2643_v47 = vld [vmem:[#allocation3 + $0x410] sm:$0xf0] }
 0x16e   :  { %v2646_v51 = vor.u32 %v2907_v46, %v2643_v47 }
 0x16f   :  { %1711 = vmatpush.bf16.msrb.mxu3 %v2502_v53  ;;  %v2834_v53 = vld [vmem:[#allocation3 + $0x1b4] sm:$0xf] }
 0x170   :  { %1701 = vmatpush.bf16.msrb.mxu2 %v2214_v55  ;;  %v2467_v55 = vld [vmem:[#allocation3 + $0x2b8] sm:$0xf0] }
 0x171   :  { %v2470_v57 = vor.u32 %v2864_v54, %v2467_v55  ;;  %v2347_v54 = vld [vmem:[#allocation3 + $0x1c8] sm:$0xf0]  ;;  %v2353_v55 = vld [vmem:[#allocation3 + $0x1b8] sm:$0xf] }
 0x173   :  { %1600 = vmatpush.bf16.msra.mxu1 %v2470_v57  ;;  %1712 = vmatpush.bf16.msrb.mxu3 %v2478_v2  ;;  %v2350_v57 = vor.u32 %v2834_v53, %v2347_v54  ;;  %v2617_v53 = vld [vmem:[#allocation3 + $0x3c8] sm:$0xf]  ;;  %v2904_v54 = vld [vmem:[#allocation3 + $0x3dc] sm:$0xf0] }
 0x174   :  { %1702 = vmatpush.bf16.msrb.mxu2 %v2190_v58  ;;  %v2473_v58 = vld [vmem:[#allocation3 + $0x2a8] sm:$0xf] }
 0x175   :  { %v2474_v0 = vor.u32 %v2868_v59, %v2473_v58  ;;  %v2838_v58 = vld [vmem:[#allocation3 + $0x1cc] sm:$0xf0]  ;;  %v2835_v59 = vld [vmem:[#allocation3 + $0x1bc] sm:$0xf] }
 0x177   :  { %1656 = vmatpush.bf16.msrb.mxu0 %v2474_v0  ;;  %v2828_v0 = vld [vmem:[#allocation3 + $0x184] sm:$0xf] }
 0x178   :  { %1703 = vmatpush.bf16.msrb.mxu2 %v2166_v62  ;;  %v2902_v62 = vld [vmem:[#allocation3 + $0x3d4] sm:$0xf]  ;;  %v2326_v2 = vor.u32 %v2828_v0, %v2323_v1  ;;  %v2898_v0 = vld [vmem:[#allocation3 + $0x3ac] sm:$0xf0]  ;;  %v2895_v1 = vld [vmem:[#allocation3 + $0x39c] sm:$0xf] }
 0x179   :  { %v2630_v5 = vor.u32 %v2902_v62, %v2627_v63  ;;  %v2354_v62 = vor.u32 %v2838_v58, %v2353_v55  ;;  %v2358_v63 = vor.u32 %v2835_v59, %v2355_v61  ;;  %v2901_v55 = vld [vmem:[#allocation3 + $0x3cc] sm:$0xf]  ;;  %v2905_v58 = vld [vmem:[#allocation3 + $0x3e4] sm:$0xf0]  ;;  %v2618_v59 = vor.u32 %v2904_v54, %v2617_v53  ;;  %v2289_v53 = vld [vmem:[#allocation3 + $0x130] sm:$0xf] }
 0x17a   :  { %v2821_v54 = vld [vmem:[#allocation3 + $0x144] sm:$0xf0] }
 0x17c   :  { %1704 = vmatpush.bf16.msrb.mxu2 %v2142_v3  ;;  %v2858_v3 = vld [vmem:[#allocation3 + $0x274] sm:$0xf] }
 0x17f   :  { %1705 = vmatmul.bf16.vlgmr.msrb.gmra.mxu2 %v3241_v60 }
 0x180   :  { %1767 = vmatpush.bf16.msra.mxu2 %v2506_v4  ;;  %v2443_v4 = vld [vmem:[#allocation3 + $0x288] sm:$0xf0] }
 0x181   :  { %v2446_v6 = vor.u32 %v2858_v3, %v2443_v4  ;;  %v2329_v3 = vld [vmem:[#allocation3 + $0x188] sm:$0xf]  ;;  %v2832_v4 = vld [vmem:[#allocation3 + $0x19c] sm:$0xf0] }
 0x183   :  { %1601 = vmatpush.bf16.msra.mxu1 %v2446_v6  ;;  %v2829_v6 = vld [vmem:[#allocation3 + $0x18c] sm:$0xf] }
 0x184   :  { %1768 = vmatpush.bf16.msra.mxu2 %v2482_v7  ;;  %v2449_v7 = vld [vmem:[#allocation3 + $0x278] sm:$0xf] }
 0x185   :  { %v2450_v12 = vor.u32 %v2862_v8, %v2449_v7  ;;  %v2331_v7 = vld [vmem:[#allocation3 + $0x1a0] sm:$0xf0] }
 0x186   :  { %v2334_v8 = vor.u32 %v2829_v6, %v2331_v7 }
 0x187   :  { %1657 = vmatpush.bf16.msrb.mxu0 %v2450_v12 }
 0x188   :  { %1769 = vmatpush.bf16.msra.mxu2 %v2458_v10  ;;  %v2896_v10 = vld [vmem:[#allocation3 + $0x3a4] sm:$0xf] }
 0x189   :  { %v2606_v19 = vor.u32 %v2896_v10, %v2603_v11 }
 0x18c   :  { %1770 = vmatpush.bf16.msra.mxu2 %v2434_v13  ;;  %v2451_v13 = vld [vmem:[#allocation3 + $0x290] sm:$0xf0] }
 0x18d   :  { %v2454_v14 = vor.u32 %v2859_v9, %v2451_v13 }
 0x18f   :  { %1713 = vmatpush.bf16.msrb.mxu3 %v2454_v14 }
 0x190   :  { %1771 = vmatpush.bf16.msra.mxu2 %v2410_v16  ;;  %v2419_v16 = vld [vmem:[#allocation3 + $0x258] sm:$0xf0] }
 0x191   :  { %v2422_v20 = vor.u32 %v2852_v15, %v2419_v16 }
 0x193   :  { %1602 = vmatpush.bf16.msra.mxu1 %v2422_v20  ;;  %1714 = vmatpush.bf16.msrb.mxu3 %v2430_v28  ;;  %v2923_v28 = vld [vmem:[#allocation3 + $0x474] sm:$0xf0] }
 0x194   :  { %1772 = vmatpush.bf16.msra.mxu2 %v2386_v21  ;;  %v2425_v21 = vld [vmem:[#allocation3 + $0x248] sm:$0xf]  ;;  %v2698_v34 = vor.u32 %v2923_v28, %v2697_v27 }
 0x195   :  { %v2426_v26 = vor.u32 %v2856_v22, %v2425_v21 }
 0x197   :  { %1658 = vmatpush.bf16.msrb.mxu0 %v2426_v26  ;;  %1715 = vmatpush.bf16.msrb.mxu3 %v2406_v40  ;;  %v2691_v26 = vld [vmem:[#allocation3 + $0x470] sm:$0xf0]  ;;  %v2917_v40 = vld [vmem:[#allocation3 + $0x444] sm:$0xf0] }
 0x198   :  { %1773 = vmatpush.bf16.msra.mxu2 %v2362_v24  ;;  %v2890_v24 = vld [vmem:[#allocation3 + $0x374] sm:$0xf] }
 0x199   :  { %v2582_v31 = vor.u32 %v2890_v24, %v2579_v25  ;;  %v2922_v24 = vld [vmem:[#allocation3 + $0x46c] sm:$0xf0]  ;;  %v2919_v25 = vld [vmem:[#allocation3 + $0x45c] sm:$0xf] }
 0x19a   :  { %v2694_v33 = vor.u32 %v2919_v25, %v2691_v26  ;;  %v2521_v26 = vld [vmem:[#allocation3 + $0x308] sm:$0xf] }
 0x19b   :  { %1659 = vmatpush.bf16.msrb.mxu0 %v2402_v38  ;;  %1716 = vmatpush.bf16.msrb.mxu3 %v2382_v52  ;;  %v2667_v38 = vld [vmem:[#allocation3 + $0x440] sm:$0xf0] }
 0x19c   :  { %1774 = vmatpush.bf16.msra.mxu2 %v2338_v29  ;;  %v2846_v29 = vld [vmem:[#allocation3 + $0x214] sm:$0xf] }
 0x19f   :  { %1775 = vmatmul.bf16.vlgmr.msra.gmra.mxu2 %v3244_v17  ;;  %1660 = vmatpush.bf16.msrb.mxu0 %v2378_v50 }
 0x1a0   :  { %1837 = vmatpush.bf16.msrb.mxu2 %v2702_v30  ;;  %v2395_v30 = vld [vmem:[#allocation3 + $0x228] sm:$0xf0]  ;;  %1717 = vmatpush.bf16.msrb.mxu3 %v2358_v63  ;;  %v2593_v63 = vld [vmem:[#allocation3 + $0x398] sm:$0xf] }
 0x1a1   :  { %v2398_v32 = vor.u32 %v2846_v29, %v2395_v30 }
 0x1a3   :  { %1603 = vmatpush.bf16.msra.mxu1 %v2398_v32  ;;  %1661 = vmatpush.bf16.msrb.mxu0 %v2354_v62 }
 0x1a4   :  { %1838 = vmatpush.bf16.msrb.mxu2 %v2678_v41  ;;  %v2840_v41 = vld [vmem:[#allocation3 + $0x1e4] sm:$0xf]  ;;  %1718 = vmatpush.bf16.msrb.mxu3 %v2334_v8  ;;  %v2569_v8 = vld [vmem:[#allocation3 + $0x368] sm:$0xf] }
 0x1a5   :  { %v2374_v44 = vor.u32 %v2840_v41, %v2371_v42  ;;  %v2666_v41 = vor.u32 %v2916_v36, %v2665_v35  ;;  %v2670_v42 = vor.u32 %v2913_v37, %v2667_v38  ;;  %v2925_v35 = vld [vmem:[#allocation3 + $0x48c] sm:$0xf]  ;;  %v2715_v36 = vld [vmem:[#allocation3 + $0x4a0] sm:$0xf0]  ;;  %v2721_v37 = vld [vmem:[#allocation3 + $0x490] sm:$0xf] }
 0x1a6   :  { %v2929_v38 = vld [vmem:[#allocation3 + $0x4a4] sm:$0xf0]  ;;  %v2718_v46 = vor.u32 %v2925_v35, %v2715_v36  ;;  %v2866_v36 = vld [vmem:[#allocation3 + $0x2b4] sm:$0xf] }
 0x1a7   :  { %1604 = vmatpush.bf16.msra.mxu1 %v2374_v44  ;;  %v2641_v44 = vld [vmem:[#allocation3 + $0x3f8] sm:$0xf]  ;;  %v2722_v47 = vor.u32 %v2929_v38, %v2721_v37  ;;  %v2483_v37 = vld [vmem:[#allocation3 + $0x2c8] sm:$0xf0] }
 0x1a8   :  { %1839 = vmatpush.bf16.msrb.mxu2 %v2654_v56  ;;  %v2534_v56 = vor.u32 %v2878_v48, %v2531_v49  ;;  %v2649_v48 = vld [vmem:[#allocation3 + $0x400] sm:$0xf]  ;;  %v2911_v49 = vld [vmem:[#allocation3 + $0x414] sm:$0xf0]  ;;  %v2642_v50 = vor.u32 %v2910_v45, %v2641_v44  ;;  %v2486_v38 = vor.u32 %v2866_v36, %v2483_v37 }
 0x1a9   :  { %v2650_v52 = vor.u32 %v2911_v49, %v2649_v48  ;;  %v2313_v44 = vld [vmem:[#allocation3 + $0x160] sm:$0xf]  ;;  %v2827_v45 = vld [vmem:[#allocation3 + $0x174] sm:$0xf0]  ;;  %v2824_v48 = vld [vmem:[#allocation3 + $0x164] sm:$0xf] }
 0x1aa   :  { %v2315_v49 = vld [vmem:[#allocation3 + $0x178] sm:$0xf0] }
 0x1ab   :  { %1605 = vmatpush.bf16.msra.mxu1 %v2350_v57  ;;  %v2625_v57 = vld [vmem:[#allocation3 + $0x3d0] sm:$0xf] }
 0x1ac   :  { %1840 = vmatpush.bf16.msrb.mxu2 %v2630_v5  ;;  %v2330_v5 = vor.u32 %v2832_v4, %v2329_v3  ;;  %v2626_v62 = vor.u32 %v2905_v58, %v2625_v57  ;;  %v2601_v3 = vld [vmem:[#allocation3 + $0x3a0] sm:$0xf]  ;;  %v2899_v4 = vld [vmem:[#allocation3 + $0x3b4] sm:$0xf0]  ;;  %v2290_v57 = vor.u32 %v2821_v54, %v2289_v53  ;;  %v2830_v54 = vld [vmem:[#allocation3 + $0x194] sm:$0xf] }
 0x1ad   :  { %v2602_v7 = vor.u32 %v2899_v4, %v2601_v3  ;;  %v2809_v3 = vld [vmem:[#allocation3 + $0xe4] sm:$0xf0]  ;;  %v2806_v4 = vld [vmem:[#allocation3 + $0xd4] sm:$0xf] }
 0x1ae   :  { %1662 = vmatpush.bf16.msrb.mxu0 %v2330_v5  ;;  %v2594_v5 = vor.u32 %v2898_v0, %v2593_v63  ;;  %v2267_v63 = vld [vmem:[#allocation3 + $0x118] sm:$0xf0] }
 0x1af   :  { %1606 = vmatpush.bf16.msra.mxu1 %v2326_v2  ;;  %v2595_v2 = vld [vmem:[#allocation3 + $0x3b0] sm:$0xf0] }
 0x1b0   :  { %1841 = vmatpush.bf16.msrb.mxu2 %v2606_v19  ;;  %v2598_v6 = vor.u32 %v2895_v1, %v2595_v2  ;;  %v2241_v2 = vld [vmem:[#allocation3 + $0xd0] sm:$0xf] }
 0x1b4   :  { %1842 = vmatpush.bf16.msrb.mxu2 %v2582_v31  ;;  %v2690_v31 = vor.u32 %v2922_v24, %v2689_v23  ;;  %v2553_v23 = vld [vmem:[#allocation3 + $0x340] sm:$0xf]  ;;  %v2887_v24 = vld [vmem:[#allocation3 + $0x354] sm:$0xf0] }
 0x1b5   :  { %v2554_v28 = vor.u32 %v2887_v24, %v2553_v23  ;;  %v2788_v23 = vld [vmem:[#allocation3 + $0x44] sm:$0xf]  ;;  %v2171_v24 = vld [vmem:[#allocation3 + $0x58] sm:$0xf0] }
 0x1b6   :  { %v555_v9 = vpop.f32.mrf.mxu0 }
 0x1b8   :  { %1843 = vmatpush.bf16.msrb.mxu2 %v2558_v43  ;;  %v2674_v43 = vor.u32 %v2917_v40, %v2673_v39  ;;  %v2926_v40 = vld [vmem:[#allocation3 + $0x494] sm:$0xf] }
 0x1bc   :  { %1844 = vmatpush.bf16.msrb.mxu2 %v2534_v56  ;;  %v541_v10 = vpop.f32.mrf.mxu3  ;;  %v2619_v56 = vld [vmem:[#allocation3 + $0x3e0] sm:$0xf0] }
 0x1bd   :  { %v556_v11 = vadd.f32 %v555_v9, %v541_v10  ;;  %v569_v12 = vpop.f32.mrf.mxu1  ;;  %v2622_v61 = vor.u32 %v2901_v55, %v2619_v56  ;;  %v2892_v9 = vld [vmem:[#allocation3 + $0x37c] sm:$0xf0]  ;;  %v2889_v10 = vld [vmem:[#allocation3 + $0x36c] sm:$0xf]  ;;  %v2818_v55 = vld [vmem:[#allocation3 + $0x134] sm:$0xf] }
 0x1be   :  { %v557_v15 = vpop.f32.mrf.mxu0  ;;  %v2291_v56 = vld [vmem:[#allocation3 + $0x148] sm:$0xf0] }
 0x1bf   :  { %1845 = vmatmul.bf16.vlgmr.msrb.gmra.mxu2 %v3246_v18  ;;  %v570_v13 = vadd.f32 %v569_v12, %v556_v11  ;;  %v2571_v11 = vld [vmem:[#allocation3 + $0x380] sm:$0xf0]  ;;  %v2577_v12 = vld [vmem:[#allocation3 + $0x370] sm:$0xf]  ;;  %v2294_v58 = vor.u32 %v2818_v55, %v2291_v56 }
 0x1c0   :  { %v3282_v56 = vld [vmem:[%s3301_s6] sm:$0x3f]  ;;  %s2991_s6 = smov [#allocation6]  }
 0x1c1   :  { %v574_v14 = vpack.c.bf16 %v570_v13, %v570_v13  ;;  %v2893_v13 = vld [vmem:[#allocation3 + $0x384] sm:$0xf0]  ;;  %s1917_s10 = sshll.u32 %s2991_s6, 4  ;;  %s1918_s10 = int_to_ptr.vmem [resolvable:$true] %s1917_s10 }
 0x1c3   :  { %577 = vst.msk [vmem:[#allocation2 + $0xc] sm:$0xf] %vm576_vm8, %v574_v14  ;;  %v2570_v14 = vor.u32 %v2892_v9, %v2569_v8  ;;  %v2217_v8 = vld [vmem:[#allocation3 + $0xa0] sm:$0xf]  ;;  %v2800_v9 = vld [vmem:[#allocation3 + $0xa4] sm:$0xf] }
 0x1c4   :  { %v543_v16 = vpop.f32.mrf.mxu3 }
 0x1c5   :  { %v558_v19 = vadd.f32 %v557_v15, %v543_v16  ;;  %v571_v20 = vpop.f32.mrf.mxu1  ;;  %v2574_v15 = vor.u32 %v2889_v10, %v2571_v11  ;;  %v2578_v16 = vor.u32 %v2893_v13, %v2577_v12  ;;  %v2219_v10 = vld [vmem:[#allocation3 + $0xb8] sm:$0xf0]  ;;  %v2193_v13 = vld [vmem:[#allocation3 + $0x70] sm:$0xf] }
 0x1c6   :  { %v2222_v12 = vor.u32 %v2800_v9, %v2219_v10 }
 0x1c7   :  { %v572_v21 = vadd.f32 %v571_v20, %v558_v19  ;;  %v2545_v19 = vld [vmem:[#allocation3 + $0x338] sm:$0xf]  ;;  %v2886_v20 = vld [vmem:[#allocation3 + $0x34c] sm:$0xf0] }
 0x1c8   :  { %v2546_v25 = vor.u32 %v2886_v20, %v2545_v19 }
 0x1c9   :  { %v575_v22 = vpack.c.bf16 %v572_v21, %v572_v21  ;;  %v2883_v21 = vld [vmem:[#allocation3 + $0x33c] sm:$0xf] }
 0x1ca   :  { %v2777_v29 = vld [vmem:[#allocation2 + $0xc] sm:$0xf] }
 0x1cb   :  { %578 = vst.msk [vmem:[#allocation2 + $0x1c] sm:$0xf] %vm576_vm8, %v575_v22  ;;  %v2547_v22 = vld [vmem:[#allocation3 + $0x350] sm:$0xf0] }
 0x1cc   :  { %v2550_v27 = vor.u32 %v2883_v21, %v2547_v22  ;;  %v2169_v21 = vld [vmem:[#allocation3 + $0x40] sm:$0xf]  ;;  %v2791_v22 = vld [vmem:[#allocation3 + $0x54] sm:$0xf0] }
 0x1d2   :  { %v2123_v30 = vld [vmem:[#allocation2 + $0x18] sm:$0xf0] }
 0x1d3   :  { %v3256_v32 = vor.u32 %v2777_v29, %v2123_v30  ;;  %v2880_v29 = vld [vmem:[#allocation3 + $0x31c] sm:$0xf0]  ;;  %v2877_v30 = vld [vmem:[#allocation3 + $0x30c] sm:$0xf] }
 0x1d4   :  { %v2522_v39 = vor.u32 %v2880_v29, %v2521_v26  ;;  %v2174_v26 = vor.u32 %v2788_v23, %v2171_v24  ;;  %v2782_v29 = vld [vmem:[#allocation3 + $0x14] sm:$0xf] }
 0x1d5   :  { %2727 = vmatmul.msk.bf16.vlgmr.msrb.gmra.mxu1 %vm228_vm1, %v3256_v32  ;;  %2728 = vmatmul.msk.bf16.vlgmr.msra.gmra.mxu0 %vm228_vm1, %v3256_v32 }
 0x1d6   :  { %1669 = vmatpush.bf16.msrb.mxu1 %v2690_v31  ;;  %2729 = vmatmul.msk.bf16.vlgmr.msra.gmra.mxu3 %vm228_vm1, %v3256_v32  ;;  %v2523_v31 = vld [vmem:[#allocation3 + $0x320] sm:$0xf0] }
 0x1d7   :  { %1725 = vmatpush.bf16.msra.mxu0 %v2694_v33  ;;  %1781 = vmatpush.bf16.msra.mxu3 %v2698_v34  ;;  %v2529_v33 = vld [vmem:[#allocation3 + $0x310] sm:$0xf]  ;;  %v2881_v34 = vld [vmem:[#allocation3 + $0x324] sm:$0xf0] }
 0x1da   :  { %1670 = vmatpush.bf16.msrb.mxu1 %v2666_v41  ;;  %v2723_v41 = vld [vmem:[#allocation3 + $0x4a8] sm:$0xf0] }
 0x1db   :  { %1726 = vmatpush.bf16.msra.mxu0 %v2670_v42  ;;  %1782 = vmatpush.bf16.msra.mxu3 %v2674_v43  ;;  %v2526_v42 = vor.u32 %v2877_v30, %v2523_v31  ;;  %v2530_v43 = vor.u32 %v2881_v34, %v2529_v33  ;;  %v2147_v30 = vld [vmem:[#allocation3 + $0x28] sm:$0xf0]  ;;  %v2872_v31 = vld [vmem:[#allocation3 + $0x2e4] sm:$0xf]  ;;  %v2507_v33 = vld [vmem:[#allocation3 + $0x2f8] sm:$0xf0] }
 0x1dc   :  { %v2510_v35 = vor.u32 %v2872_v31, %v2507_v33 }
 0x1de   :  { %1671 = vmatpush.bf16.msrb.mxu1 %v2642_v50  ;;  %v2726_v50 = vor.u32 %v2926_v40, %v2723_v41  ;;  %v2459_v40 = vld [vmem:[#allocation3 + $0x298] sm:$0xf0] }
 0x1df   :  { %1727 = vmatpush.bf16.msra.mxu0 %v2646_v51  ;;  %1783 = vmatpush.bf16.msra.mxu3 %v2650_v52  ;;  %v2314_v51 = vor.u32 %v2827_v45, %v2313_v44  ;;  %v2318_v52 = vor.u32 %v2824_v48, %v2315_v49  ;;  %v2848_v45 = vld [vmem:[#allocation3 + $0x224] sm:$0xf]  ;;  %v2842_v48 = vld [vmem:[#allocation3 + $0x1f4] sm:$0xf]  ;;  %v2387_v49 = vld [vmem:[#allocation3 + $0x208] sm:$0xf0] }
 0x1e2   :  { %1672 = vmatpush.bf16.msrb.mxu1 %v2618_v59  ;;  %v2265_v59 = vld [vmem:[#allocation3 + $0x100] sm:$0xf] }
 0x1e3   :  { %1728 = vmatpush.bf16.msra.mxu0 %v2622_v61  ;;  %1784 = vmatpush.bf16.msra.mxu3 %v2626_v62  ;;  %v2815_v61 = vld [vmem:[#allocation3 + $0x114] sm:$0xf0]  ;;  %v2812_v62 = vld [vmem:[#allocation3 + $0x104] sm:$0xf] }
 0x1e4   :  { %v2266_v0 = vor.u32 %v2815_v61, %v2265_v59  ;;  %v2270_v1 = vor.u32 %v2812_v62, %v2267_v63  ;;  %v1552_v59 = vpop.f32.mrf.mxu3  ;;  %v1566_v61 = vpop.f32.mrf.mxu0 }
 0x1e5   :  { %1607 = vmatmul.bf16.vlgmr.msra.gmra.mxu1 %v3244_v17  ;;  %1663 = vmatmul.bf16.vlgmr.msrb.gmra.mxu0 %v3244_v17 }
 0x1e6   :  { %1673 = vmatpush.bf16.msrb.mxu1 %v2594_v5  ;;  %1719 = vmatmul.bf16.vlgmr.msrb.gmra.mxu3 %v3244_v17  ;;  %v2243_v5 = vld [vmem:[#allocation3 + $0xe8] sm:$0xf0] }
 0x1e7   :  { %1729 = vmatpush.bf16.msra.mxu0 %v2598_v6  ;;  %1785 = vmatpush.bf16.msra.mxu3 %v2602_v7  ;;  %v2242_v6 = vor.u32 %v2809_v3, %v2241_v2  ;;  %v2246_v7 = vor.u32 %v2806_v4, %v2243_v5 }
 0x1ea   :  { %1674 = vmatpush.bf16.msrb.mxu1 %v2570_v14  ;;  %v2797_v14 = vld [vmem:[#allocation3 + $0x84] sm:$0xf0] }
 0x1eb   :  { %1730 = vmatpush.bf16.msra.mxu0 %v2574_v15  ;;  %1786 = vmatpush.bf16.msra.mxu3 %v2578_v16  ;;  %v2794_v15 = vld [vmem:[#allocation3 + $0x74] sm:$0xf]  ;;  %v2195_v16 = vld [vmem:[#allocation3 + $0x88] sm:$0xf0]  ;;  %v2194_v19 = vor.u32 %v2797_v14, %v2193_v13 }
 0x1ec   :  { %v2198_v20 = vor.u32 %v2794_v15, %v2195_v16  ;;  %v1568_v3 = vpop.f32.mrf.mxu0 }
 0x1ee   :  { %1675 = vmatpush.bf16.msrb.mxu1 %v2546_v25  ;;  %v2170_v25 = vor.u32 %v2791_v22, %v2169_v21 }
 0x1ef   :  { %1731 = vmatpush.bf16.msra.mxu0 %v2550_v27  ;;  %1787 = vmatpush.bf16.msra.mxu3 %v2554_v28  ;;  %v2145_v27 = vld [vmem:[#allocation3 + $0x10] sm:$0xf]  ;;  %v2785_v28 = vld [vmem:[#allocation3 + $0x24] sm:$0xf0] }
 0x1f0   :  { %v2146_v34 = vor.u32 %v2785_v28, %v2145_v27 }
 0x1f2   :  { %1676 = vmatpush.bf16.msrb.mxu1 %v2522_v39  ;;  %v2860_v39 = vld [vmem:[#allocation3 + $0x284] sm:$0xf] }
 0x1f3   :  { %1732 = vmatpush.bf16.msra.mxu0 %v2526_v42  ;;  %1788 = vmatpush.bf16.msra.mxu3 %v2530_v43  ;;  %v2462_v41 = vor.u32 %v2860_v39, %v2459_v40  ;;  %v2854_v42 = vld [vmem:[#allocation3 + $0x254] sm:$0xf]  ;;  %v2435_v43 = vld [vmem:[#allocation3 + $0x268] sm:$0xf0] }
 0x1f4   :  { %v2438_v44 = vor.u32 %v2854_v42, %v2435_v43 }
 0x1f5   :  { %1677 = vmatmul.bf16.vlgmr.msrb.gmra.mxu1 %v3246_v18 }
 0x1f6   :  { %1746 = vmatpush.bf16.msra.mxu1 %v2718_v46  ;;  %1733 = vmatmul.bf16.vlgmr.msra.gmra.mxu0 %v3246_v18  ;;  %v2411_v46 = vld [vmem:[#allocation3 + $0x238] sm:$0xf0] }
 0x1f7   :  { %1802 = vmatpush.bf16.msrb.mxu0 %v2722_v47  ;;  %1858 = vmatpush.bf16.msrb.mxu3 %v2726_v50  ;;  %v2414_v47 = vor.u32 %v2848_v45, %v2411_v46  ;;  %v2390_v50 = vor.u32 %v2842_v48, %v2387_v49 }
 0x1f8   :  { %1789 = vmatmul.bf16.vlgmr.msra.gmra.mxu3 %v3246_v18  ;;  %v2803_v18 = vld [vmem:[#allocation3 + $0xb4] sm:$0xf0] }
 0x1f9   :  { %v2218_v11 = vor.u32 %v2803_v18, %v2217_v8 }
 0x1fa   :  { %1753 = vmatpush.bf16.msrb.mxu1 %v2314_v51  ;;  %v2836_v51 = vld [vmem:[#allocation3 + $0x1c4] sm:$0xf] }
 0x1fb   :  { %1809 = vmatpush.bf16.msra.mxu0 %v2318_v52  ;;  %v2363_v52 = vld [vmem:[#allocation3 + $0x1d8] sm:$0xf0] }
 0x1fc   :  { %v2366_v53 = vor.u32 %v2836_v51, %v2363_v52 }
 0x1fe   :  { %1754 = vmatpush.bf16.msrb.mxu1 %v2290_v57  ;;  %v1538_v57 = vpop.f32.mrf.mxu2 }
 0x1ff   :  { %1810 = vmatpush.bf16.msra.mxu0 %v2294_v58  ;;  %v3285_v58 = vunpack.c.l.bf16 %v3282_v56 }
 0x201   :  { %v738_v62 = vperm.slane %v3285_v58, 0  ;;  %v739_v13 = vperm.slane %v3285_v58, 2  ;;  %v740_v31 = vperm.slane %v3285_v58, 4  ;;  %v741_v51 = vperm.slane %v3285_v58, 6 }
 0x202   :  { %1755 = vmatpush.bf16.msrb.mxu1 %v2266_v0 }
 0x203   :  { %1811 = vmatpush.bf16.msra.mxu0 %v2270_v1  ;;  %v750_v63 = vperm.slane %v738_v62, 0  ;;  %v1554_v1 = vpop.f32.mrf.mxu3  ;;  %v752_v37 = vperm.slane %v740_v31, 0 }
 0x205   :  { %2730 = vmatmul.msk.bf16.vlgmr.msra.gmra.mxu1 %vm228_vm1, %v3256_v32  ;;  %v1539_v2 = vadd.f32 %v1538_v57, %v750_v63 }
 0x206   :  { %1756 = vmatpush.bf16.msrb.mxu1 %v2242_v6  ;;  %2731 = vmatmul.msk.bf16.vlgmr.msrb.gmra.mxu0 %vm228_vm1, %v3256_v32  ;;  %v1540_v0 = vpop.f32.mrf.mxu2 }
 0x207   :  { %1812 = vmatpush.bf16.msra.mxu0 %v2246_v7  ;;  %v1553_v4 = vadd.f32 %v1552_v59, %v1539_v2  ;;  %v1541_v7 = vadd.f32 %v1540_v0, %v750_v63 }
 0x208   :  { %2732 = vmatmul.msk.bf16.vlgmr.msrb.gmra.mxu3 %vm228_vm1, %v3256_v32  ;;  %v2150_v32 = vor.u32 %v2782_v29, %v2147_v30 }
 0x209   :  { %v1555_v10 = vadd.f32 %v1554_v1, %v1541_v7 }
 0x20a   :  { %1757 = vmatpush.bf16.msrb.mxu1 %v2218_v11 }
 0x20b   :  { %1813 = vmatpush.bf16.msra.mxu0 %v2222_v12  ;;  %v1622_v18 = vpop.f32.mrf.mxu3  ;;  %v1569_v14 = vadd.f32 %v1568_v3, %v1555_v10 }
 0x20e   :  { %1758 = vmatpush.bf16.msrb.mxu1 %v2194_v19  ;;  %v1594_v5 = vpop.f32.mrf.mxu2 }
 0x20f   :  { %1814 = vmatpush.bf16.msra.mxu0 %v2198_v20  ;;  %v751_v20 = vperm.slane %v739_v13, 0  ;;  %v735_v13 = vunpack.c.h.bf16 %v3282_v56 }
 0x212   :  { %1759 = vmatpush.bf16.msrb.mxu1 %v2170_v25  ;;  %v1595_v25 = vadd.f32 %v1594_v5, %v751_v20 }
 0x213   :  { %1815 = vmatpush.bf16.msra.mxu0 %v2174_v26  ;;  %v1624_v22 = vpop.f32.mrf.mxu3 }
 0x216   :  { %1760 = vmatpush.bf16.msrb.mxu1 %v2146_v34  ;;  %v1596_v19 = vpop.f32.mrf.mxu2 }
 0x217   :  { %1816 = vmatpush.bf16.msra.mxu0 %v2150_v32  ;;  %v1597_v32 = vadd.f32 %v1596_v19, %v751_v20  ;;  %v742_v19 = vperm.slane %v735_v13, 0 }
 0x219   :  { %1761 = vmatmul.bf16.vlgmr.msrb.gmra.mxu1 %v3241_v60 }
 0x21a   :  { %1823 = vmatpush.bf16.msra.mxu1 %v2510_v35  ;;  %1817 = vmatmul.bf16.vlgmr.msra.gmra.mxu0 %v3241_v60  ;;  %v2339_v60 = vld [vmem:[#allocation3 + $0x1a8] sm:$0xf0] }
 0x21b   :  { %v2342_v55 = vor.u32 %v2830_v54, %v2339_v60 }
 0x21e   :  { %1824 = vmatpush.bf16.msra.mxu1 %v2486_v38  ;;  %v1650_v29 = vpop.f32.mrf.mxu2 }
 0x222   :  { %1825 = vmatpush.bf16.msra.mxu1 %v2462_v41  ;;  %v1651_v41 = vadd.f32 %v1650_v29, %v752_v37 }
 0x226   :  { %1826 = vmatpush.bf16.msra.mxu1 %v2438_v44  ;;  %v1652_v43 = vpop.f32.mrf.mxu2 }
 0x22a   :  { %1827 = vmatpush.bf16.msra.mxu1 %v2414_v47 }
 0x22e   :  { %1828 = vmatpush.bf16.msra.mxu1 %v2390_v50  ;;  %v1706_v60 = vpop.f32.mrf.mxu2 }
 0x232   :  { %1829 = vmatpush.bf16.msra.mxu1 %v2366_v53  ;;  %v1653_v53 = vadd.f32 %v1652_v43, %v752_v37 }
 0x236   :  { %1830 = vmatpush.bf16.msra.mxu1 %v2342_v55  ;;  %v753_v55 = vperm.slane %v741_v51, 0  ;;  %v1708_v5 = vpop.f32.mrf.mxu2 }
 0x238   :  { %v1707_v1 = vadd.f32 %v1706_v60, %v753_v55 }
 0x239   :  { %1831 = vmatmul.bf16.vlgmr.msra.gmra.mxu1 %v3244_v17  ;;  %v1567_v17 = vadd.f32 %v1566_v61, %v1553_v4 }
 0x252   :  { %v1580_v6 = vpop.f32.mrf.mxu1  ;;  %v1636_v9 = vpop.f32.mrf.mxu0 }
 0x253   :  { %v1581_v8 = vadd.f32 %v1580_v6, %v1567_v17 }
 0x255   :  { %vm1865_vm9 = vcmp.ge.f32.partialorder %v1581_v8, 0.0  ;;  %v1877_v11 = vmul.f32 0.01, %v1581_v8 }
 0x257   :  { %v1889_v12 = vsel %vm1865_vm9, %v1581_v8, %v1877_v11 }
 0x258   :  { %1901 = vst [vmem:[#allocation6] sm:$0xff] %v1889_v12 }
 0x259   :  { %v1692_v30 = vpop.f32.mrf.mxu3 }
 0x25a   :  { %v1582_v15 = vpop.f32.mrf.mxu1  ;;  %v1638_v23 = vpop.f32.mrf.mxu0 }
 0x25b   :  { %v1583_v16 = vadd.f32 %v1582_v15, %v1569_v14 }
 0x25d   :  { %vm1871_vm10 = vcmp.ge.f32.partialorder %v1583_v16, 0.0  ;;  %v1883_v21 = vmul.f32 0.01, %v1583_v16 }
 0x25f   :  { %v1895_v24 = vsel %vm1871_vm10, %v1583_v16, %v1883_v21 }
 0x260   :  { %1907 = vst [vmem:[#allocation6 + $0x30] sm:$0xff] %v1895_v24 }
 0x261   :  { %v1694_v44 = vpop.f32.mrf.mxu3 }
 0x262   :  { %v1608_v26 = vpop.f32.mrf.mxu1  ;;  %v1664_v34 = vpop.f32.mrf.mxu0 }
 0x263   :  { %v1609_v27 = vadd.f32 %v1608_v26, %v1595_v25  ;;  %v1665_v45 = vadd.f32 %v1664_v34, %v1651_v41 }
 0x265   :  { %v1623_v28 = vadd.f32 %v1622_v18, %v1609_v27  ;;  %v1709_v18 = vadd.f32 %v1708_v5, %v753_v55 }
 0x267   :  { %v1637_v33 = vadd.f32 %v1636_v9, %v1623_v28 }
 0x269   :  { %vm1866_vm11 = vcmp.ge.f32.partialorder %v1637_v33, 0.0  ;;  %v1878_v35 = vmul.f32 0.01, %v1637_v33  ;;  %v1720_v61 = vpop.f32.mrf.mxu3 }
 0x26a   :  { %v1610_v36 = vpop.f32.mrf.mxu1  ;;  %v1666_v47 = vpop.f32.mrf.mxu0  ;;  %v1721_v3 = vadd.f32 %v1720_v61, %v1707_v1 }
 0x26b   :  { %v1890_v38 = vsel %vm1866_vm11, %v1637_v33, %v1878_v35  ;;  %v1611_v39 = vadd.f32 %v1610_v36, %v1597_v32  ;;  %v1667_v57 = vadd.f32 %v1666_v47, %v1653_v53 }
 0x26c   :  { %1902 = vst [vmem:[#allocation6 + $0x8] sm:$0xff] %v1890_v38 }
 0x26d   :  { %v1625_v40 = vadd.f32 %v1624_v22, %v1611_v39  ;;  %v754_v22 = vperm.slane %v742_v19, 0 }
 0x26f   :  { %v1639_v42 = vadd.f32 %v1638_v23, %v1625_v40  ;;  %v1776_v23 = vpop.f32.mrf.mxu2 }
 0x271   :  { %vm1872_vm12 = vcmp.ge.f32.partialorder %v1639_v42, 0.0  ;;  %v1884_v46 = vmul.f32 0.01, %v1639_v42  ;;  %v1722_v8 = vpop.f32.mrf.mxu3 }
 0x272   :  { %v1678_v48 = vpop.f32.mrf.mxu1  ;;  %v1723_v11 = vadd.f32 %v1722_v8, %v1709_v18 }
 0x273   :  { %v1896_v49 = vsel %vm1872_vm12, %v1639_v42, %v1884_v46  ;;  %v1679_v50 = vadd.f32 %v1678_v48, %v1665_v45  ;;  %v1734_v0 = vpop.f32.mrf.mxu0  ;;  %v743_v42 = vperm.slane %v735_v13, 2 }
 0x274   :  { %1908 = vst [vmem:[#allocation6 + $0x38] sm:$0xff] %v1896_v49  ;;  %v1735_v17 = vadd.f32 %v1734_v0, %v1721_v3 }
 0x275   :  { %v1693_v52 = vadd.f32 %v1692_v30, %v1679_v50 }
 0x277   :  { %vm1867_vm13 = vcmp.ge.f32.partialorder %v1693_v52, 0.0  ;;  %v1879_v54 = vmul.f32 0.01, %v1693_v52  ;;  %v1778_v34 = vpop.f32.mrf.mxu2 }
 0x279   :  { %v1891_v59 = vsel %vm1867_vm13, %v1693_v52, %v1879_v54 }
 0x27a   :  { %1903 = vst [vmem:[#allocation6 + $0x10] sm:$0xff] %v1891_v59  ;;  %v1680_v62 = vpop.f32.mrf.mxu1 }
 0x27b   :  { %v1681_v63 = vadd.f32 %v1680_v62, %v1667_v57  ;;  %v1736_v10 = vpop.f32.mrf.mxu0  ;;  %v1790_v26 = vpop.f32.mrf.mxu3 }
 0x27c   :  { %v1737_v14 = vadd.f32 %v1736_v10, %v1723_v11 }
 0x27d   :  { %v1695_v2 = vadd.f32 %v1694_v44, %v1681_v63  ;;  %v755_v44 = vperm.slane %v743_v42, 0 }
 0x27f   :  { %vm1873_vm14 = vcmp.ge.f32.partialorder %v1695_v2, 0.0  ;;  %v1885_v4 = vmul.f32 0.01, %v1695_v2  ;;  %v1846_v46 = vpop.f32.mrf.mxu2 }
 0x281   :  { %v1897_v58 = vsel %vm1873_vm14, %v1695_v2, %v1885_v4 }
 0x282   :  { %1909 = vst [vmem:[#allocation6 + $0x40] sm:$0xff] %v1897_v58  ;;  %v1748_v6 = vpop.f32.mrf.mxu1 }
 0x283   :  { %v1749_v7 = vadd.f32 %v1748_v6, %v1735_v17  ;;  %v1804_v27 = vpop.f32.mrf.mxu0  ;;  %v1792_v36 = vpop.f32.mrf.mxu3 }
 0x285   :  { %vm1868_vm15 = vcmp.ge.f32.partialorder %v1749_v7, 0.0  ;;  %v1880_v9 = vmul.f32 0.01, %v1749_v7 }
 0x287   :  { %v1892_v12 = vsel %vm1868_vm15, %v1749_v7, %v1880_v9  ;;  %v1848_v59 = vpop.f32.mrf.mxu2 }
 0x288   :  { %1904 = vst [vmem:[#allocation6 + $0x18] sm:$0xff] %v1892_v12 }
 0x28a   :  { %v1750_v15 = vpop.f32.mrf.mxu1 }
 0x28b   :  { %v1751_v16 = vadd.f32 %v1750_v15, %v1737_v14  ;;  %v1806_v37 = vpop.f32.mrf.mxu0  ;;  %v1860_v49 = vpop.f32.mrf.mxu3 }
 0x28d   :  { %vm1874_vm0 = vcmp.ge.f32.partialorder %v1751_v16, 0.0  ;;  %v1886_v20 = vmul.f32 0.01, %v1751_v16 }
 0x28f   :  { %v1898_v21 = vsel %vm1874_vm0, %v1751_v16, %v1886_v20 }
 0x290   :  { %1910 = vst [vmem:[#allocation6 + $0x48] sm:$0xff] %v1898_v21 }
 0x293   :  { %v1862_v62 = vpop.f32.mrf.mxu3 }
 0x296   :  { %v1762_v24 = vpop.f32.mrf.mxu1 }
 0x297   :  { %v1763_v25 = vadd.f32 %v1762_v24, %v754_v22  ;;  %v1818_v43 = vpop.f32.mrf.mxu0 }
 0x298   :  { %v1819_v45 = vadd.f32 %v1818_v43, %v755_v44 }
 0x299   :  { %v1777_v28 = vadd.f32 %v1776_v23, %v1763_v25 }
 0x29b   :  { %v1791_v29 = vadd.f32 %v1790_v26, %v1777_v28 }
 0x29d   :  { %v1805_v30 = vadd.f32 %v1804_v27, %v1791_v29 }
 0x29e   :  { %v1764_v31 = vpop.f32.mrf.mxu1 }
 0x29f   :  { %vm1869_vm1 = vcmp.ge.f32.partialorder %v1805_v30, 0.0  ;;  %v1881_v56 = vmul.f32 0.01, %v1805_v30  ;;  %v1765_v33 = vadd.f32 %v1764_v31, %v754_v22  ;;  %v1820_v51 = vpop.f32.mrf.mxu0 }
 0x2a0   :  { %v1821_v53 = vadd.f32 %v1820_v51, %v755_v44 }
 0x2a1   :  { %v1893_v32 = vsel %vm1869_vm1, %v1805_v30, %v1881_v56  ;;  %v1779_v35 = vadd.f32 %v1778_v34, %v1765_v33 }
 0x2a2   :  { %1905 = vst [vmem:[#allocation6 + $0x20] sm:$0xff] %v1893_v32 }
 0x2a3   :  { %v1793_v38 = vadd.f32 %v1792_v36, %v1779_v35 }
 0x2a5   :  { %v1807_v39 = vadd.f32 %v1806_v37, %v1793_v38 }
 0x2a7   :  { %vm1875_vm2 = vcmp.ge.f32.partialorder %v1807_v39, 0.0  ;;  %v1887_v40 = vmul.f32 0.01, %v1807_v39 }
 0x2a9   :  { %v1899_v41 = vsel %vm1875_vm2, %v1807_v39, %v1887_v40 }
 0x2aa   :  { %1911 = vst [vmem:[#allocation6 + $0x50] sm:$0xff] %v1899_v41 }
 0x2b6   :  { %v1832_v47 = vpop.f32.mrf.mxu1 }
 0x2b7   :  { %v1833_v48 = vadd.f32 %v1832_v47, %v1819_v45 }
 0x2b9   :  { %v1847_v50 = vadd.f32 %v1846_v46, %v1833_v48 }
 0x2bb   :  { %v1861_v52 = vadd.f32 %v1860_v49, %v1847_v50 }
 0x2bd   :  { %vm1870_vm3 = vcmp.ge.f32.partialorder %v1861_v52, 0.0  ;;  %v1882_v54 = vmul.f32 0.01, %v1861_v52 }
 0x2be   :  { %v1834_v60 = vpop.f32.mrf.mxu1 }
 0x2bf   :  { %v1894_v55 = vsel %vm1870_vm3, %v1861_v52, %v1882_v54  ;;  %v1835_v57 = vadd.f32 %v1834_v60, %v1821_v53 }
 0x2c0   :  { %1906 = vst [vmem:[#allocation6 + $0x28] sm:$0xff] %v1894_v55 }
 0x2c1   :  { %v1849_v61 = vadd.f32 %v1848_v59, %v1835_v57 }
 0x2c3   :  { %v1863_v63 = vadd.f32 %v1862_v62, %v1849_v61 }
 0x2c5   :  { %vm1876_vm4 = vcmp.ge.f32.partialorder %v1863_v63, 0.0  ;;  %v1888_v0 = vmul.f32 0.01, %v1863_v63 }
 0x2c7   :  { %v1900_v1 = vsel %vm1876_vm4, %v1863_v63, %v1888_v0 }
 0x2c8   :  { %1912 = vst [vmem:[#allocation6 + $0x58] sm:$0xff] %v1900_v1 }
 0x2c9   :  { %1925 = dma.vmem_to_hbm [thread:$0]  %s1918_s10, 1536, %s1920_s13, [#allocation5], %s2992_s5, %s2992_s5, %s2993_s14  }
 0x2ca   :  { %2986 = dma.done.wait [#allocation5], 1536  }
 0x2cb   :  { %2987 = vsyncadd [#allocation5], 4294965760 }
 0x2cc   :  { %1930 = vsyncpa [#allocation4], 1 }
 0x2cd   :  { %1931 = vsyncpa [#allocation5], 1 }

</bundles_post_ra>
